<compile_context>
chip_gen: v7x
topology: tpu7x:2x2x1
jax: 0.10.0
libtpu: 0.0.40
codegen_flags: <defaults>
</compile_context>

<pallas_src>
import functools

import jax
import jax.numpy as jnp
from jax.experimental import pallas as pl
from jax.experimental.pallas import tpu as pltpu

EMBEDDING_DIM = 50
LSTM_HIDDEN_DIM = 50
EPAD = 64    # embedding dim padded for aligned K in the front matmuls
HPAD = 128   # hidden padded to one full 128-lane group -> lane-aligned gate slices
CPAD = 128   # output classes padded to a full lane group -> unmasked output stores


# ------------------------------ Fused kernel --------------------------------
def fused_ner_kernel(ids_ref, emb_ref, wih_ref, whh_ref, bl_ref, wfc_ref, bfc_ref,
                     out_ref, *, T):
    """Embedding + LSTM + Linear + log_softmax for one batch tile.

    ids_ref : (Bt*T, 1) int32       token ids of this batch tile, row order b*T + t
    emb_ref : (V, EPAD)  bf16       embedding table (zero-padded columns)
    wih_ref : (EPAD, 4*HPAD) bf16   W_ih^T, gate blocks [i|f|o|g] at stride HPAD, zero-padded
    whh_ref : (HPAD, 4*HPAD) bf16   W_hh^T, rows >= H and padded gate columns are zero
    bl_ref  : (1, 4*HPAD) f32       b_ih + b_hh, zero in padded columns
    wfc_ref : (HPAD, CPAD) f32      FC weight^T, rows >= H and columns >= C zero
    bfc_ref : (1, CPAD) f32         FC bias, -1e30 in padded columns
    out_ref : (Bt*T, CPAD) f32      log-probabilities (padded columns are garbage, sliced off)
    """
    BtT = ids_ref.shape[0]
    Bt = BtT // T
    V = emb_ref.shape[0]
    Hp = whh_ref.shape[0]

    # ---- Embedding lookup fused in-kernel as a one-hot matmul (tiny vocab).
    # TODO(synk): for a large vocabulary this should become a scalar-prefetch /
    # DMA row gather instead of a one-hot matmul (and re-budget VMEM on v7x).
    ids = ids_ref[...]                                                    # (Bt*T, 1)
    iota_v = jax.lax.broadcasted_iota(jnp.int32, (BtT, V), 1)
    onehot = (ids == iota_v).astype(jnp.bfloat16)                         # (Bt*T, V)
    x = jnp.dot(onehot, emb_ref[...],
                preferred_element_type=jnp.float32).astype(jnp.bfloat16)  # (Bt*T, EPAD)

    # ---- Input projection hoisted out of the recurrence: all timesteps at once.
    gx = jnp.dot(x, wih_ref[...], preferred_element_type=jnp.float32) + bl_ref[...]
    gx = gx.reshape(Bt, T, 4 * Hp)                                        # (Bt, T, 4*Hp)

    # ---- Recurrence weight loaded ONCE (bf16, 32 vregs): no per-step re-streaming.
    whh = whh_ref[...]

    # ---- Time recurrence, fully unrolled (T is a trace-time constant).
    # Elementwise gate math stays f32 (v5e has no bf16 VPU/EUP); only the matmul
    # operand is cast to bf16, accumulation is f32.
    h = jnp.zeros((Bt, Hp), jnp.float32)
    c = jnp.zeros((Bt, Hp), jnp.float32)
    hs = []
    for t in range(T):
        gates = gx[:, t, :] + jnp.dot(h.astype(jnp.bfloat16), whh,
                                      preferred_element_type=jnp.float32)  # (Bt, 4*Hp)
        # Gate order packed as [i | f | o | g]: one sigmoid over 3 contiguous
        # 128-lane blocks, one tanh over the last block.
        sig = jax.nn.sigmoid(gates[:, 0:3 * Hp])
        g_g = jnp.tanh(gates[:, 3 * Hp:4 * Hp])
        i_g = sig[:, 0 * Hp:1 * Hp]
        f_g = sig[:, 1 * Hp:2 * Hp]
        o_g = sig[:, 2 * Hp:3 * Hp]
        c = f_g * c + i_g * g_g
        h = o_g * jnp.tanh(c)
        # Padded lanes stay exactly 0: zero weight/bias columns -> gate preact 0,
        # so c_pad = 0.5 * c_pad stays 0 and h_pad = 0.5 * tanh(0) = 0.
        hs.append(h)

    # ---- Hidden states stay in vregs (Bt*T*HPAD f32 is tiny): no VMEM scratch.
    h_flat = jnp.stack(hs, axis=1).reshape(BtT, Hp)                        # (Bt*T, Hp)

    # ---- FC + log_softmax over the padded 128 output lanes; -1e30 pad bias makes
    # exp(pad) == 0 so max/sum are exact over the real classes. Lane-dense store.
    logits = jnp.dot(h_flat, wfc_ref[...],
                     preferred_element_type=jnp.float32) + bfc_ref[...]    # (Bt*T, CPAD)
    z = logits - jnp.max(logits, axis=-1, keepdims=True)
    out_ref[...] = z - jnp.log(jnp.sum(jnp.exp(z), axis=-1, keepdims=True))


# ------------------------------ Wrapper --------------------------------------
def net_forward(tokens, p, *, b_tile=1):
    """tokens: (B, T) int32. Returns (B*T, C) log-probabilities (matches torch Net)."""
    B, T = tokens.shape
    assert B % b_tile == 0, "batch must be divisible by the batch tile"
    V, Ep = p["embedding"].shape
    Hp = p["w_hh_p"].shape[0]
    Cp = p["w_fc_p"].shape[1]
    C = p["num_tags"]
    rows = b_tile * T

    ids = tokens.reshape(B * T, 1).astype(jnp.int32)   # free contiguous reshape

    out_padded = pl.pallas_call(
        functools.partial(fused_ner_kernel, T=T),
        out_shape=jax.ShapeDtypeStruct((B * T, Cp), jnp.float32),
        grid_spec=pltpu.PrefetchScalarGridSpec(
            num_scalar_prefetch=0,
            grid=(B // b_tile,),   # batch-parallel grid axis (2 TCs on v7x)
            in_specs=[
                pl.BlockSpec((rows, 1), lambda i: (i, 0)),         # ids (per batch tile)
                pl.BlockSpec((V, Ep), lambda i: (0, 0)),           # embedding (bf16)
                pl.BlockSpec((Ep, 4 * HPAD), lambda i: (0, 0)),    # W_ih^T (bf16, padded)
                pl.BlockSpec((HPAD, 4 * HPAD), lambda i: (0, 0)),  # W_hh^T (bf16, padded)
                pl.BlockSpec((1, 4 * HPAD), lambda i: (0, 0)),     # b_ih + b_hh
                pl.BlockSpec((HPAD, CPAD), lambda i: (0, 0)),      # W_fc^T (padded)
                pl.BlockSpec((1, CPAD), lambda i: (0, 0)),         # b_fc (padded, -1e30)
            ],
            out_specs=pl.BlockSpec((rows, CPAD), lambda i: (i, 0)),
        ),
        compiler_params=pltpu.CompilerParams(
            dimension_semantics=("parallel",)),
    )(ids, p["embedding"], p["w_ih_p"], p["w_hh_p"], p["b_lstm_p"],
      p["w_fc_p"], p["b_fc_p"])

    return out_padded[:, :C]


def pad_params(embedding, w_ih, w_hh, b_ih, b_hh, w_fc, b_fc):
    """Pack PyTorch-layout weights into the padded, lane-aligned kernel layout.

    w_ih: (4H, E), w_hh: (4H, H), b_ih/b_hh: (4H,), w_fc: (C, H), b_fc: (C,).
    PyTorch gate order is i, f, g, o; the kernel packs gates as [i | f | o | g]
    so the three sigmoid gates are contiguous. Padded rows/columns are zero
    (bias padded with -1e30 only for the FC output columns) so padded hidden
    lanes remain exactly zero through the recurrence and log_softmax is exact.
    Done once, outside the forward pass.
    """
    V, E = embedding.shape
    H = w_hh.shape[1]
    C = w_fc.shape[0]
    src = (0, 1, 3, 2)   # packed gate slot s <- torch gate block src[s]  (i, f, o, g)

    wih_t = w_ih.T.astype(jnp.float32)        # (E, 4H)
    whh_t = w_hh.T.astype(jnp.float32)        # (H, 4H)
    b = (b_ih + b_hh).astype(jnp.float32)     # (4H,)

    emb_p = jnp.zeros((V, EPAD), jnp.float32).at[:, :E].set(embedding.astype(jnp.float32))
    wih_p = jnp.zeros((EPAD, 4 * HPAD), jnp.float32)
    whh_p = jnp.zeros((HPAD, 4 * HPAD), jnp.float32)
    b_p = jnp.zeros((1, 4 * HPAD), jnp.float32)
    for s, g in enumerate(src):
        wih_p = wih_p.at[:E, s * HPAD:s * HPAD + H].set(wih_t[:, g * H:(g + 1) * H])
        whh_p = whh_p.at[:H, s * HPAD:s * HPAD + H].set(whh_t[:, g * H:(g + 1) * H])
        b_p = b_p.at[0, s * HPAD:s * HPAD + H].set(b[g * H:(g + 1) * H])

    wfc_p = jnp.zeros((HPAD, CPAD), jnp.float32).at[:H, :C].set(w_fc.T.astype(jnp.float32))
    bfc_p = jnp.full((1, CPAD), -1e30, jnp.float32).at[0, :C].set(b_fc.astype(jnp.float32))

    return {
        "embedding": emb_p.astype(jnp.bfloat16),   # one-hot gather is exact in bf16
        "w_ih_p": wih_p.astype(jnp.bfloat16),
        "w_hh_p": whh_p.astype(jnp.bfloat16),
        "b_lstm_p": b_p,
        "w_fc_p": wfc_p,
        "b_fc_p": bfc_p,
        "num_tags": C,
    }


# ------------------------ Pure-JAX reference (check) -------------------------
def net_forward_ref(tokens, embedding, w_ih, w_hh, b_ih, b_hh, w_fc, b_fc):
    B, T = tokens.shape
    H = w_hh.shape[1]
    emb = jnp.take(embedding, tokens, axis=0)                 # (B, T, E)
    wih_t, whh_t, b = w_ih.T, w_hh.T, b_ih + b_hh

    def step(carry, x_t):
        h, c = carry
        gates = x_t @ wih_t + h @ whh_t + b
        i = jax.nn.sigmoid(gates[:, 0:H])
        f = jax.nn.sigmoid(gates[:, H:2 * H])
        g = jnp.tanh(gates[:, 2 * H:3 * H])
        o = jax.nn.sigmoid(gates[:, 3 * H:4 * H])
        c = f * c + i * g
        h = o * jnp.tanh(c)
        return (h, c), h

    h0 = jnp.zeros((B, H), jnp.float32)
    (_, _), hs = jax.lax.scan(step, (h0, h0), jnp.transpose(emb, (1, 0, 2)))
    h_flat = jnp.transpose(hs, (1, 0, 2)).reshape(B * T, H)
    logits = h_flat @ w_fc.T + b_fc
    return jax.nn.log_softmax(logits, axis=1)


# --------------------------------- Main ---------------------------------------
if __name__ == "__main__":
    vocab_size, number_of_tags = 30, 5
    B, T = 2, 8
    E, H = EMBEDDING_DIM, LSTM_HIDDEN_DIM

    key = jax.random.PRNGKey(0)
    ks = jax.random.split(key, 8)
    embedding = 0.1 * jax.random.normal(ks[0], (vocab_size, E), jnp.float32)
    w_ih = 0.1 * jax.random.normal(ks[1], (4 * H, E), jnp.float32)   # PyTorch layout
    w_hh = 0.1 * jax.random.normal(ks[2], (4 * H, H), jnp.float32)
    b_ih = 0.1 * jax.random.normal(ks[3], (4 * H,), jnp.float32)
    b_hh = 0.1 * jax.random.normal(ks[4], (4 * H,), jnp.float32)
    w_fc = 0.1 * jax.random.normal(ks[5], (number_of_tags, H), jnp.float32)
    b_fc = 0.1 * jax.random.normal(ks[6], (number_of_tags,), jnp.float32)
    tokens = jax.random.randint(ks[7], (B, T), 0, vocab_size, jnp.int32)

    params = pad_params(embedding, w_ih, w_hh, b_ih, b_hh, w_fc, b_fc)  # one-time pack

    out = jax.block_until_ready(net_forward(tokens, params))
    ref = jax.block_until_ready(
        net_forward_ref(tokens, embedding, w_ih, w_hh, b_ih, b_hh, w_fc, b_fc))

    assert out.shape == (B * T, number_of_tags)
    # bf16 matmul operands (f32 accumulation) -> slightly looser tolerance vs f32 ref.
    assert jnp.allclose(out, ref, rtol=2e-2, atol=2e-2), "mismatch vs reference"
    print("KERNEL_OK")
</pallas_src>

<mosaic_0001>
module attributes {stable_mosaic.version = 11 : i64} {
  func.func @fused_ner_kernel(%arg0: i32, %arg1: memref<8x1xi32, #tpu.memory_space<vmem>>, %arg2: memref<30x64xbf16, #tpu.memory_space<vmem>>, %arg3: memref<64x512xbf16, #tpu.memory_space<vmem>>, %arg4: memref<128x512xbf16, #tpu.memory_space<vmem>>, %arg5: memref<1x512xf32, #tpu.memory_space<vmem>>, %arg6: memref<128x128xf32, #tpu.memory_space<vmem>>, %arg7: memref<1x128xf32, #tpu.memory_space<vmem>>, %arg8: memref<8x128xf32, #tpu.memory_space<vmem>>) attributes {dimension_semantics = [#tpu.dimension_semantics<parallel>], iteration_bounds = array<i64: 2>, scalar_prefetch = 0 : i64, scratch_operands = 0 : i64, tpu.core_type = #tpu.core_type<tc>, window_params = [{transform_indices = @transform_0, window_bounds = array<i64: 8, 1>}, {pipeline_mode = #tpu.pipeline_mode<synchronous>, transform_indices = @transform_1, window_bounds = array<i64: 30, 64>}, {pipeline_mode = #tpu.pipeline_mode<synchronous>, transform_indices = @transform_2, window_bounds = array<i64: 64, 512>}, {pipeline_mode = #tpu.pipeline_mode<synchronous>, transform_indices = @transform_3, window_bounds = array<i64: 128, 512>}, {pipeline_mode = #tpu.pipeline_mode<synchronous>, transform_indices = @transform_4, window_bounds = array<i64: 1, 512>}, {pipeline_mode = #tpu.pipeline_mode<synchronous>, transform_indices = @transform_5, window_bounds = array<i64: 128, 128>}, {pipeline_mode = #tpu.pipeline_mode<synchronous>, transform_indices = @transform_6, window_bounds = array<i64: 1, 128>}, {transform_indices = @transform_7, window_bounds = array<i64: 8, 128>}]} {
    %c0 = arith.constant 0 : index
    %c0_0 = arith.constant 0 : index
    %0 = vector.load %arg1[%c0, %c0_0] : memref<8x1xi32, #tpu.memory_space<vmem>>, vector<8x1xi32>
    %1 = tpu.iota {dimensions = array<i32: 1>} : vector<8x30xi32>
    %2 = vector.broadcast %0 : vector<8x1xi32> to vector<8x30xi32>
    %3 = arith.cmpi eq, %2, %1 : vector<8x30xi32>
    %4 = arith.extui %3 : vector<8x30xi1> to vector<8x30xi32>
    %5 = arith.sitofp %4 : vector<8x30xi32> to vector<8x30xf32>
    %6 = arith.truncf %5 : vector<8x30xf32> to vector<8x30xbf16>
    %c0_1 = arith.constant 0 : index
    %c0_2 = arith.constant 0 : index
    %7 = vector.load %arg2[%c0_1, %c0_2] : memref<30x64xbf16, #tpu.memory_space<vmem>>, vector<30x64xbf16>
    %cst = arith.constant dense<0.000000e+00> : vector<8x64xf32>
    %8 = tpu.matmul %6, %7, %cst {dimension_numbers = #tpu.dot_dimension_numbers<[1], [0], [0], [1], [0, 0, 1, 1], [], []>} : vector<8x30xbf16>, vector<30x64xbf16>, vector<8x64xf32> -> vector<8x64xf32>
    %9 = arith.truncf %8 : vector<8x64xf32> to vector<8x64xbf16>
    %c0_3 = arith.constant 0 : index
    %c0_4 = arith.constant 0 : index
    %10 = vector.load %arg3[%c0_3, %c0_4] : memref<64x512xbf16, #tpu.memory_space<vmem>>, vector<64x512xbf16>
    %cst_5 = arith.constant dense<0.000000e+00> : vector<8x512xf32>
    %11 = tpu.matmul %9, %10, %cst_5 {dimension_numbers = #tpu.dot_dimension_numbers<[1], [0], [0], [1], [0, 0, 1, 1], [], []>} : vector<8x64xbf16>, vector<64x512xbf16>, vector<8x512xf32> -> vector<8x512xf32>
    %c0_6 = arith.constant 0 : index
    %c0_7 = arith.constant 0 : index
    %12 = vector.load %arg5[%c0_6, %c0_7] : memref<1x512xf32, #tpu.memory_space<vmem>>, vector<1x512xf32>
    %13 = vector.broadcast %12 : vector<1x512xf32> to vector<8x512xf32>
    %14 = arith.addf %11, %13 : vector<8x512xf32>
    %15 = vector.shape_cast %14 : vector<8x512xf32> to vector<1x8x512xf32>
    %c0_8 = arith.constant 0 : index
    %c0_9 = arith.constant 0 : index
    %16 = vector.load %arg4[%c0_8, %c0_9] : memref<128x512xbf16, #tpu.memory_space<vmem>>, vector<128x512xbf16>
    %cst_10 = arith.constant 0.000000e+00 : f32
    %17 = vector.broadcast %cst_10 : f32 to vector<1x128xf32>
    %cst_11 = arith.constant 0.000000e+00 : f32
    %18 = vector.broadcast %cst_11 : f32 to vector<1x128xf32>
    %19 = vector.extract_strided_slice %15 {offsets = [0, 0, 0], sizes = [1, 1, 512], strides = [1, 1, 1]} : vector<1x8x512xf32> to vector<1x1x512xf32>
    %20 = vector.shape_cast %19 : vector<1x1x512xf32> to vector<1x512xf32>
    %21 = arith.truncf %17 : vector<1x128xf32> to vector<1x128xbf16>
    %cst_12 = arith.constant dense<0.000000e+00> : vector<1x512xf32>
    %22 = tpu.matmul %21, %16, %cst_12 {dimension_numbers = #tpu.dot_dimension_numbers<[1], [0], [0], [1], [0, 0, 1, 1], [], []>} : vector<1x128xbf16>, vector<128x512xbf16>, vector<1x512xf32> -> vector<1x512xf32>
    %23 = arith.addf %20, %22 : vector<1x512xf32>
    %24 = vector.extract_strided_slice %23 {offsets = [0, 0], sizes = [1, 384], strides = [1, 1]} : vector<1x512xf32> to vector<1x384xf32>
    %25 = arith.negf %24 : vector<1x384xf32>
    %26 = math.exp %25 : vector<1x384xf32>
    %cst_13 = arith.constant 1.000000e+00 : f32
    %27 = vector.broadcast %cst_13 : f32 to vector<1x384xf32>
    %28 = arith.addf %27, %26 : vector<1x384xf32>
    %29 = arith.divf %27, %28 : vector<1x384xf32>
    %30 = vector.extract_strided_slice %23 {offsets = [0, 384], sizes = [1, 128], strides = [1, 1]} : vector<1x512xf32> to vector<1x128xf32>
    %31 = math.tanh %30 : vector<1x128xf32>
    %32 = vector.extract_strided_slice %29 {offsets = [0, 0], sizes = [1, 128], strides = [1, 1]} : vector<1x384xf32> to vector<1x128xf32>
    %33 = vector.extract_strided_slice %29 {offsets = [0, 128], sizes = [1, 128], strides = [1, 1]} : vector<1x384xf32> to vector<1x128xf32>
    %34 = vector.extract_strided_slice %29 {offsets = [0, 256], sizes = [1, 128], strides = [1, 1]} : vector<1x384xf32> to vector<1x128xf32>
    %35 = arith.mulf %33, %18 : vector<1x128xf32>
    %36 = arith.mulf %32, %31 : vector<1x128xf32>
    %37 = arith.addf %35, %36 : vector<1x128xf32>
    %38 = math.tanh %37 : vector<1x128xf32>
    %39 = arith.mulf %34, %38 : vector<1x128xf32>
    %40 = vector.extract_strided_slice %15 {offsets = [0, 1, 0], sizes = [1, 1, 512], strides = [1, 1, 1]} : vector<1x8x512xf32> to vector<1x1x512xf32>
    %41 = vector.shape_cast %40 : vector<1x1x512xf32> to vector<1x512xf32>
    %42 = arith.truncf %39 : vector<1x128xf32> to vector<1x128xbf16>
    %cst_14 = arith.constant dense<0.000000e+00> : vector<1x512xf32>
    %43 = tpu.matmul %42, %16, %cst_14 {dimension_numbers = #tpu.dot_dimension_numbers<[1], [0], [0], [1], [0, 0, 1, 1], [], []>} : vector<1x128xbf16>, vector<128x512xbf16>, vector<1x512xf32> -> vector<1x512xf32>
    %44 = arith.addf %41, %43 : vector<1x512xf32>
    %45 = vector.extract_strided_slice %44 {offsets = [0, 0], sizes = [1, 384], strides = [1, 1]} : vector<1x512xf32> to vector<1x384xf32>
    %46 = arith.negf %45 : vector<1x384xf32>
    %47 = math.exp %46 : vector<1x384xf32>
    %cst_15 = arith.constant 1.000000e+00 : f32
    %48 = vector.broadcast %cst_15 : f32 to vector<1x384xf32>
    %49 = arith.addf %48, %47 : vector<1x384xf32>
    %50 = arith.divf %48, %49 : vector<1x384xf32>
    %51 = vector.extract_strided_slice %44 {offsets = [0, 384], sizes = [1, 128], strides = [1, 1]} : vector<1x512xf32> to vector<1x128xf32>
    %52 = math.tanh %51 : vector<1x128xf32>
    %53 = vector.extract_strided_slice %50 {offsets = [0, 0], sizes = [1, 128], strides = [1, 1]} : vector<1x384xf32> to vector<1x128xf32>
    %54 = vector.extract_strided_slice %50 {offsets = [0, 128], sizes = [1, 128], strides = [1, 1]} : vector<1x384xf32> to vector<1x128xf32>
    %55 = vector.extract_strided_slice %50 {offsets = [0, 256], sizes = [1, 128], strides = [1, 1]} : vector<1x384xf32> to vector<1x128xf32>
    %56 = arith.mulf %54, %37 : vector<1x128xf32>
    %57 = arith.mulf %53, %52 : vector<1x128xf32>
    %58 = arith.addf %56, %57 : vector<1x128xf32>
    %59 = math.tanh %58 : vector<1x128xf32>
    %60 = arith.mulf %55, %59 : vector<1x128xf32>
    %61 = vector.extract_strided_slice %15 {offsets = [0, 2, 0], sizes = [1, 1, 512], strides = [1, 1, 1]} : vector<1x8x512xf32> to vector<1x1x512xf32>
    %62 = vector.shape_cast %61 : vector<1x1x512xf32> to vector<1x512xf32>
    %63 = arith.truncf %60 : vector<1x128xf32> to vector<1x128xbf16>
    %cst_16 = arith.constant dense<0.000000e+00> : vector<1x512xf32>
    %64 = tpu.matmul %63, %16, %cst_16 {dimension_numbers = #tpu.dot_dimension_numbers<[1], [0], [0], [1], [0, 0, 1, 1], [], []>} : vector<1x128xbf16>, vector<128x512xbf16>, vector<1x512xf32> -> vector<1x512xf32>
    %65 = arith.addf %62, %64 : vector<1x512xf32>
    %66 = vector.extract_strided_slice %65 {offsets = [0, 0], sizes = [1, 384], strides = [1, 1]} : vector<1x512xf32> to vector<1x384xf32>
    %67 = arith.negf %66 : vector<1x384xf32>
    %68 = math.exp %67 : vector<1x384xf32>
    %cst_17 = arith.constant 1.000000e+00 : f32
    %69 = vector.broadcast %cst_17 : f32 to vector<1x384xf32>
    %70 = arith.addf %69, %68 : vector<1x384xf32>
    %71 = arith.divf %69, %70 : vector<1x384xf32>
    %72 = vector.extract_strided_slice %65 {offsets = [0, 384], sizes = [1, 128], strides = [1, 1]} : vector<1x512xf32> to vector<1x128xf32>
    %73 = math.tanh %72 : vector<1x128xf32>
    %74 = vector.extract_strided_slice %71 {offsets = [0, 0], sizes = [1, 128], strides = [1, 1]} : vector<1x384xf32> to vector<1x128xf32>
    %75 = vector.extract_strided_slice %71 {offsets = [0, 128], sizes = [1, 128], strides = [1, 1]} : vector<1x384xf32> to vector<1x128xf32>
    %76 = vector.extract_strided_slice %71 {offsets = [0, 256], sizes = [1, 128], strides = [1, 1]} : vector<1x384xf32> to vector<1x128xf32>
    %77 = arith.mulf %75, %58 : vector<1x128xf32>
    %78 = arith.mulf %74, %73 : vector<1x128xf32>
    %79 = arith.addf %77, %78 : vector<1x128xf32>
    %80 = math.tanh %79 : vector<1x128xf32>
    %81 = arith.mulf %76, %80 : vector<1x128xf32>
    %82 = vector.extract_strided_slice %15 {offsets = [0, 3, 0], sizes = [1, 1, 512], strides = [1, 1, 1]} : vector<1x8x512xf32> to vector<1x1x512xf32>
    %83 = vector.shape_cast %82 : vector<1x1x512xf32> to vector<1x512xf32>
    %84 = arith.truncf %81 : vector<1x128xf32> to vector<1x128xbf16>
    %cst_18 = arith.constant dense<0.000000e+00> : vector<1x512xf32>
    %85 = tpu.matmul %84, %16, %cst_18 {dimension_numbers = #tpu.dot_dimension_numbers<[1], [0], [0], [1], [0, 0, 1, 1], [], []>} : vector<1x128xbf16>, vector<128x512xbf16>, vector<1x512xf32> -> vector<1x512xf32>
    %86 = arith.addf %83, %85 : vector<1x512xf32>
    %87 = vector.extract_strided_slice %86 {offsets = [0, 0], sizes = [1, 384], strides = [1, 1]} : vector<1x512xf32> to vector<1x384xf32>
    %88 = arith.negf %87 : vector<1x384xf32>
    %89 = math.exp %88 : vector<1x384xf32>
    %cst_19 = arith.constant 1.000000e+00 : f32
    %90 = vector.broadcast %cst_19 : f32 to vector<1x384xf32>
    %91 = arith.addf %90, %89 : vector<1x384xf32>
    %92 = arith.divf %90, %91 : vector<1x384xf32>
    %93 = vector.extract_strided_slice %86 {offsets = [0, 384], sizes = [1, 128], strides = [1, 1]} : vector<1x512xf32> to vector<1x128xf32>
    %94 = math.tanh %93 : vector<1x128xf32>
    %95 = vector.extract_strided_slice %92 {offsets = [0, 0], sizes = [1, 128], strides = [1, 1]} : vector<1x384xf32> to vector<1x128xf32>
    %96 = vector.extract_strided_slice %92 {offsets = [0, 128], sizes = [1, 128], strides = [1, 1]} : vector<1x384xf32> to vector<1x128xf32>
    %97 = vector.extract_strided_slice %92 {offsets = [0, 256], sizes = [1, 128], strides = [1, 1]} : vector<1x384xf32> to vector<1x128xf32>
    %98 = arith.mulf %96, %79 : vector<1x128xf32>
    %99 = arith.mulf %95, %94 : vector<1x128xf32>
    %100 = arith.addf %98, %99 : vector<1x128xf32>
    %101 = math.tanh %100 : vector<1x128xf32>
    %102 = arith.mulf %97, %101 : vector<1x128xf32>
    %103 = vector.extract_strided_slice %15 {offsets = [0, 4, 0], sizes = [1, 1, 512], strides = [1, 1, 1]} : vector<1x8x512xf32> to vector<1x1x512xf32>
    %104 = vector.shape_cast %103 : vector<1x1x512xf32> to vector<1x512xf32>
    %105 = arith.truncf %102 : vector<1x128xf32> to vector<1x128xbf16>
    %cst_20 = arith.constant dense<0.000000e+00> : vector<1x512xf32>
    %106 = tpu.matmul %105, %16, %cst_20 {dimension_numbers = #tpu.dot_dimension_numbers<[1], [0], [0], [1], [0, 0, 1, 1], [], []>} : vector<1x128xbf16>, vector<128x512xbf16>, vector<1x512xf32> -> vector<1x512xf32>
    %107 = arith.addf %104, %106 : vector<1x512xf32>
    %108 = vector.extract_strided_slice %107 {offsets = [0, 0], sizes = [1, 384], strides = [1, 1]} : vector<1x512xf32> to vector<1x384xf32>
    %109 = arith.negf %108 : vector<1x384xf32>
    %110 = math.exp %109 : vector<1x384xf32>
    %cst_21 = arith.constant 1.000000e+00 : f32
    %111 = vector.broadcast %cst_21 : f32 to vector<1x384xf32>
    %112 = arith.addf %111, %110 : vector<1x384xf32>
    %113 = arith.divf %111, %112 : vector<1x384xf32>
    %114 = vector.extract_strided_slice %107 {offsets = [0, 384], sizes = [1, 128], strides = [1, 1]} : vector<1x512xf32> to vector<1x128xf32>
    %115 = math.tanh %114 : vector<1x128xf32>
    %116 = vector.extract_strided_slice %113 {offsets = [0, 0], sizes = [1, 128], strides = [1, 1]} : vector<1x384xf32> to vector<1x128xf32>
    %117 = vector.extract_strided_slice %113 {offsets = [0, 128], sizes = [1, 128], strides = [1, 1]} : vector<1x384xf32> to vector<1x128xf32>
    %118 = vector.extract_strided_slice %113 {offsets = [0, 256], sizes = [1, 128], strides = [1, 1]} : vector<1x384xf32> to vector<1x128xf32>
    %119 = arith.mulf %117, %100 : vector<1x128xf32>
    %120 = arith.mulf %116, %115 : vector<1x128xf32>
    %121 = arith.addf %119, %120 : vector<1x128xf32>
    %122 = math.tanh %121 : vector<1x128xf32>
    %123 = arith.mulf %118, %122 : vector<1x128xf32>
    %124 = vector.extract_strided_slice %15 {offsets = [0, 5, 0], sizes = [1, 1, 512], strides = [1, 1, 1]} : vector<1x8x512xf32> to vector<1x1x512xf32>
    %125 = vector.shape_cast %124 : vector<1x1x512xf32> to vector<1x512xf32>
    %126 = arith.truncf %123 : vector<1x128xf32> to vector<1x128xbf16>
    %cst_22 = arith.constant dense<0.000000e+00> : vector<1x512xf32>
    %127 = tpu.matmul %126, %16, %cst_22 {dimension_numbers = #tpu.dot_dimension_numbers<[1], [0], [0], [1], [0, 0, 1, 1], [], []>} : vector<1x128xbf16>, vector<128x512xbf16>, vector<1x512xf32> -> vector<1x512xf32>
    %128 = arith.addf %125, %127 : vector<1x512xf32>
    %129 = vector.extract_strided_slice %128 {offsets = [0, 0], sizes = [1, 384], strides = [1, 1]} : vector<1x512xf32> to vector<1x384xf32>
    %130 = arith.negf %129 : vector<1x384xf32>
    %131 = math.exp %130 : vector<1x384xf32>
    %cst_23 = arith.constant 1.000000e+00 : f32
    %132 = vector.broadcast %cst_23 : f32 to vector<1x384xf32>
    %133 = arith.addf %132, %131 : vector<1x384xf32>
    %134 = arith.divf %132, %133 : vector<1x384xf32>
    %135 = vector.extract_strided_slice %128 {offsets = [0, 384], sizes = [1, 128], strides = [1, 1]} : vector<1x512xf32> to vector<1x128xf32>
    %136 = math.tanh %135 : vector<1x128xf32>
    %137 = vector.extract_strided_slice %134 {offsets = [0, 0], sizes = [1, 128], strides = [1, 1]} : vector<1x384xf32> to vector<1x128xf32>
    %138 = vector.extract_strided_slice %134 {offsets = [0, 128], sizes = [1, 128], strides = [1, 1]} : vector<1x384xf32> to vector<1x128xf32>
    %139 = vector.extract_strided_slice %134 {offsets = [0, 256], sizes = [1, 128], strides = [1, 1]} : vector<1x384xf32> to vector<1x128xf32>
    %140 = arith.mulf %138, %121 : vector<1x128xf32>
    %141 = arith.mulf %137, %136 : vector<1x128xf32>
    %142 = arith.addf %140, %141 : vector<1x128xf32>
    %143 = math.tanh %142 : vector<1x128xf32>
    %144 = arith.mulf %139, %143 : vector<1x128xf32>
    %145 = vector.extract_strided_slice %15 {offsets = [0, 6, 0], sizes = [1, 1, 512], strides = [1, 1, 1]} : vector<1x8x512xf32> to vector<1x1x512xf32>
    %146 = vector.shape_cast %145 : vector<1x1x512xf32> to vector<1x512xf32>
    %147 = arith.truncf %144 : vector<1x128xf32> to vector<1x128xbf16>
    %cst_24 = arith.constant dense<0.000000e+00> : vector<1x512xf32>
    %148 = tpu.matmul %147, %16, %cst_24 {dimension_numbers = #tpu.dot_dimension_numbers<[1], [0], [0], [1], [0, 0, 1, 1], [], []>} : vector<1x128xbf16>, vector<128x512xbf16>, vector<1x512xf32> -> vector<1x512xf32>
    %149 = arith.addf %146, %148 : vector<1x512xf32>
    %150 = vector.extract_strided_slice %149 {offsets = [0, 0], sizes = [1, 384], strides = [1, 1]} : vector<1x512xf32> to vector<1x384xf32>
    %151 = arith.negf %150 : vector<1x384xf32>
    %152 = math.exp %151 : vector<1x384xf32>
    %cst_25 = arith.constant 1.000000e+00 : f32
    %153 = vector.broadcast %cst_25 : f32 to vector<1x384xf32>
    %154 = arith.addf %153, %152 : vector<1x384xf32>
    %155 = arith.divf %153, %154 : vector<1x384xf32>
    %156 = vector.extract_strided_slice %149 {offsets = [0, 384], sizes = [1, 128], strides = [1, 1]} : vector<1x512xf32> to vector<1x128xf32>
    %157 = math.tanh %156 : vector<1x128xf32>
    %158 = vector.extract_strided_slice %155 {offsets = [0, 0], sizes = [1, 128], strides = [1, 1]} : vector<1x384xf32> to vector<1x128xf32>
    %159 = vector.extract_strided_slice %155 {offsets = [0, 128], sizes = [1, 128], strides = [1, 1]} : vector<1x384xf32> to vector<1x128xf32>
    %160 = vector.extract_strided_slice %155 {offsets = [0, 256], sizes = [1, 128], strides = [1, 1]} : vector<1x384xf32> to vector<1x128xf32>
    %161 = arith.mulf %159, %142 : vector<1x128xf32>
    %162 = arith.mulf %158, %157 : vector<1x128xf32>
    %163 = arith.addf %161, %162 : vector<1x128xf32>
    %164 = math.tanh %163 : vector<1x128xf32>
    %165 = arith.mulf %160, %164 : vector<1x128xf32>
    %166 = vector.extract_strided_slice %15 {offsets = [0, 7, 0], sizes = [1, 1, 512], strides = [1, 1, 1]} : vector<1x8x512xf32> to vector<1x1x512xf32>
    %167 = vector.shape_cast %166 : vector<1x1x512xf32> to vector<1x512xf32>
    %168 = arith.truncf %165 : vector<1x128xf32> to vector<1x128xbf16>
    %cst_26 = arith.constant dense<0.000000e+00> : vector<1x512xf32>
    %169 = tpu.matmul %168, %16, %cst_26 {dimension_numbers = #tpu.dot_dimension_numbers<[1], [0], [0], [1], [0, 0, 1, 1], [], []>} : vector<1x128xbf16>, vector<128x512xbf16>, vector<1x512xf32> -> vector<1x512xf32>
    %170 = arith.addf %167, %169 : vector<1x512xf32>
    %171 = vector.extract_strided_slice %170 {offsets = [0, 0], sizes = [1, 384], strides = [1, 1]} : vector<1x512xf32> to vector<1x384xf32>
    %172 = arith.negf %171 : vector<1x384xf32>
    %173 = math.exp %172 : vector<1x384xf32>
    %cst_27 = arith.constant 1.000000e+00 : f32
    %174 = vector.broadcast %cst_27 : f32 to vector<1x384xf32>
    %175 = arith.addf %174, %173 : vector<1x384xf32>
    %176 = arith.divf %174, %175 : vector<1x384xf32>
    %177 = vector.extract_strided_slice %170 {offsets = [0, 384], sizes = [1, 128], strides = [1, 1]} : vector<1x512xf32> to vector<1x128xf32>
    %178 = math.tanh %177 : vector<1x128xf32>
    %179 = vector.extract_strided_slice %176 {offsets = [0, 0], sizes = [1, 128], strides = [1, 1]} : vector<1x384xf32> to vector<1x128xf32>
    %180 = vector.extract_strided_slice %176 {offsets = [0, 128], sizes = [1, 128], strides = [1, 1]} : vector<1x384xf32> to vector<1x128xf32>
    %181 = vector.extract_strided_slice %176 {offsets = [0, 256], sizes = [1, 128], strides = [1, 1]} : vector<1x384xf32> to vector<1x128xf32>
    %182 = arith.mulf %180, %163 : vector<1x128xf32>
    %183 = arith.mulf %179, %178 : vector<1x128xf32>
    %184 = arith.addf %182, %183 : vector<1x128xf32>
    %185 = math.tanh %184 : vector<1x128xf32>
    %186 = arith.mulf %181, %185 : vector<1x128xf32>
    %187 = vector.shape_cast %39 : vector<1x128xf32> to vector<1x1x128xf32>
    %188 = vector.shape_cast %60 : vector<1x128xf32> to vector<1x1x128xf32>
    %189 = vector.shape_cast %81 : vector<1x128xf32> to vector<1x1x128xf32>
    %190 = vector.shape_cast %102 : vector<1x128xf32> to vector<1x1x128xf32>
    %191 = vector.shape_cast %123 : vector<1x128xf32> to vector<1x1x128xf32>
    %192 = vector.shape_cast %144 : vector<1x128xf32> to vector<1x1x128xf32>
    %193 = vector.shape_cast %165 : vector<1x128xf32> to vector<1x1x128xf32>
    %194 = vector.shape_cast %186 : vector<1x128xf32> to vector<1x1x128xf32>
    %195 = tpu.concatenate %187, %188, %189, %190, %191, %192, %193, %194 in 1 : vector<1x1x128xf32>, vector<1x1x128xf32>, vector<1x1x128xf32>, vector<1x1x128xf32>, vector<1x1x128xf32>, vector<1x1x128xf32>, vector<1x1x128xf32>, vector<1x1x128xf32> -> vector<1x8x128xf32>
    %196 = vector.shape_cast %195 : vector<1x8x128xf32> to vector<8x128xf32>
    %c0_28 = arith.constant 0 : index
    %c0_29 = arith.constant 0 : index
    %197 = vector.load %arg6[%c0_28, %c0_29] : memref<128x128xf32, #tpu.memory_space<vmem>>, vector<128x128xf32>
    %cst_30 = arith.constant dense<0.000000e+00> : vector<8x128xf32>
    %198 = tpu.matmul %196, %197, %cst_30 {dimension_numbers = #tpu.dot_dimension_numbers<[1], [0], [0], [1], [0, 0, 1, 1], [], []>} : vector<8x128xf32>, vector<128x128xf32>, vector<8x128xf32> -> vector<8x128xf32>
    %c0_31 = arith.constant 0 : index
    %c0_32 = arith.constant 0 : index
    %199 = vector.load %arg7[%c0_31, %c0_32] : memref<1x128xf32, #tpu.memory_space<vmem>>, vector<1x128xf32>
    %200 = vector.broadcast %199 : vector<1x128xf32> to vector<8x128xf32>
    %201 = arith.addf %198, %200 : vector<8x128xf32>
    %cst_33 = arith.constant dense<0xFF800000> : vector<8xf32>
    %202 = vector.multi_reduction <maximumf>, %201, %cst_33 [1] : vector<8x128xf32> to vector<8xf32>
    %203 = vector.shape_cast %202 : vector<8xf32> to vector<8x1xf32>
    %204 = vector.broadcast %203 : vector<8x1xf32> to vector<8x128xf32>
    %205 = arith.subf %201, %204 : vector<8x128xf32>
    %206 = math.exp %205 : vector<8x128xf32>
    %cst_34 = arith.constant dense<0.000000e+00> : vector<8xf32>
    %207 = vector.multi_reduction <add>, %206, %cst_34 [1] : vector<8x128xf32> to vector<8xf32>
    %208 = vector.shape_cast %207 : vector<8xf32> to vector<8x1xf32>
    %209 = math.log %208 : vector<8x1xf32>
    %210 = vector.broadcast %209 : vector<8x1xf32> to vector<8x128xf32>
    %211 = arith.subf %205, %210 : vector<8x128xf32>
    %c0_35 = arith.constant 0 : index
    %c0_36 = arith.constant 0 : index
    %212 = vector.load %arg8[%c0_35, %c0_36] : memref<8x128xf32, #tpu.memory_space<vmem>>, vector<8x128xf32>
    tpu.vector_store %arg8[%c0_35, %c0_36], %211 {strides = array<i32>} : memref<8x128xf32, #tpu.memory_space<vmem>>, vector<8x128xf32>,
    return
  }
  func.func @transform_0(%arg0: i32) -> (i32, i32) {
    %c0_i32 = arith.constant 0 : i32
    %c0_i32_0 = arith.constant 0 : i32
    return %arg0, %c0_i32 : i32, i32
  }
  func.func @transform_1(%arg0: i32) -> (i32, i32) {
    %c0_i32 = arith.constant 0 : i32
    %c0_i32_0 = arith.constant 0 : i32
    %c0_i32_1 = arith.constant 0 : i32
    return %c0_i32, %c0_i32_0 : i32, i32
  }
  func.func @transform_2(%arg0: i32) -> (i32, i32) {
    %c0_i32 = arith.constant 0 : i32
    %c0_i32_0 = arith.constant 0 : i32
    %c0_i32_1 = arith.constant 0 : i32
    return %c0_i32, %c0_i32_0 : i32, i32
  }
  func.func @transform_3(%arg0: i32) -> (i32, i32) {
    %c0_i32 = arith.constant 0 : i32
    %c0_i32_0 = arith.constant 0 : i32
    %c0_i32_1 = arith.constant 0 : i32
    return %c0_i32, %c0_i32_0 : i32, i32
  }
  func.func @transform_4(%arg0: i32) -> (i32, i32) {
    %c0_i32 = arith.constant 0 : i32
    %c0_i32_0 = arith.constant 0 : i32
    %c0_i32_1 = arith.constant 0 : i32
    return %c0_i32, %c0_i32_0 : i32, i32
  }
  func.func @transform_5(%arg0: i32) -> (i32, i32) {
    %c0_i32 = arith.constant 0 : i32
    %c0_i32_0 = arith.constant 0 : i32
    %c0_i32_1 = arith.constant 0 : i32
    return %c0_i32, %c0_i32_0 : i32, i32
  }
  func.func @transform_6(%arg0: i32) -> (i32, i32) {
    %c0_i32 = arith.constant 0 : i32
    %c0_i32_0 = arith.constant 0 : i32
    %c0_i32_1 = arith.constant 0 : i32
    return %c0_i32, %c0_i32_0 : i32, i32
  }
  func.func @transform_7(%arg0: i32) -> (i32, i32) {
    %c0_i32 = arith.constant 0 : i32
    %c0_i32_0 = arith.constant 0 : i32
    return %arg0, %c0_i32 : i32, i32
  }
}

</mosaic_0001>

<bundles_post_ra>
// kernel: tpu_custom_call.1
= control target key start
LH: loop header
LB: loop body
LE: loop exit
PB: predicated region body
PF: predicated region fallthrough
CT: control target
= control target key end

     0   :  { %12 = vsyncpa [#allocation3], 0  ;;  %s3407_s0 = inlined_call_operand.vmem [shape: s32[16,1], index: 0, kind: input, shape index: {}]   ;;  %s3408_s1 = inlined_call_operand.vmem [shape: bf16[30,64], index: 1, kind: input, shape index: {}]   ;;  %s3409_s2 = inlined_call_operand.hbm [shape: bf16[64,512], index: 2, kind: input, shape index: {}]   ;;  %s3410_s3 = inlined_call_operand.hbm [shape: bf16[128,512], index: 3, kind: input, shape index: {}]   ;;  %s3411_s4 = inlined_call_operand.vmem [shape: f32[1,512], index: 4, kind: input, shape index: {}]   ;;  %s3412_s5 = inlined_call_operand.hbm [shape: f32[128,128], index: 5, kind: input, shape index: {}]   ;;  %s3413_s6 = inlined_call_operand.vmem [shape: f32[1,128], index: 6, kind: input, shape index: {}]   ;;  %s3414_s7 = inlined_call_operand.hbm [shape: f32[16,128], index: 7, kind: output, shape index: {}]  }
   0x1   :  { %13 = vsyncpa [#allocation6], 0 }
   0x2   :  { %14 = vsyncpa [#allocation4], 0 }
   0x3   :  { %16 = vsyncpa [#allocation4 + $0x1], 0  ;;  %s2731_s24 = smov 0   ;;  %s2733_s25 = smov 0  }
   0x4   :  { %s2735_s26 = smov 0   ;;  %s2737_s27 = smov 0  }
   0x5 LB: > { %3421 = sst [smem:[#allocation12_spill]] %s2673_s26  ;;  %s2752_s28 = sadd.s32 4294967295, %s2677_s27   ;;  %s2677_s27 = sphi %s2737_s27, %s3436_s27   ;;  %s2673_s26 = sphi %s2735_s26, %s3441_s26   ;;  %s2669_s25 = sphi %s2733_s25, %s3440_s25   ;;  %s2665_s24 = sphi %s2731_s24, %s3439_s24  }
   0x6   : > { %s2025_s29 = sadd.s32 4294967294, %s2677_s27   ;;  %s2756_s30 = sadd.s32 1, %s2677_s27  }
   0x7   : > { %3422 = sst [smem:[#allocation13_spill]] %s2756_s30  ;;  %s181_s8 = sadd.s32 1, %s2673_s26 }
   0x8   : > { %s178_s9 = ssub.s32 %s2677_s27, %s2756_s30  ;;  %p191_p0 = scmp.ne.s32.totalorder %s2673_s26, %s2669_s25 }
   0x9   : > { %p179_p1 = scmp.eq.s32.totalorder %s178_s9, 0  ;;  %p192_p2 = scmp.eq.s32.totalorder %s2752_s28, 1 }
   0xa   : > { %p197_p3 = scmp.ne.s32.totalorder %s2669_s25, %s2665_s24  ;;  %p198_p4 = scmp.eq.s32.totalorder %s2025_s29, 1 }
   0xb   : > { %s2767_s10 = scalar_select %p179_p1, %s2673_s26, %s181_s8  }
   0xc   : > { %p2769_p5 = por %p192_p2, %p191_p0  ;;  %p2773_p6 = por %p198_p4, %p197_p3 }
   0xd   : > { %3423 = sst [smem:[#allocation14_spill]] %s2767_s10  ;;  %p2026_p7 = scmp.ge.s32.totalorder %s2677_s27, 1 }
   0xe   : > { %s3424_s11 = scalar_select %p2769_p5, 1, 0 }
   0xf   : > { %s3425_s12 = scalar_select %p2773_p6, 1, 0 }
  0x10   : > { %p205_p8 = scmp.lt.s32.totalorder %s2677_s27, 3  ;;  %p3415_p9 = scmp.eq.s32.totalorder %s2752_s28, 0 }
  0x11   : > { %s2679_s14 = smov [#allocation5]   ;;  %s2680_s17 = smov [#allocation2]  }
  0x12   : > { %p2780_p10 = pnand %p2026_p7, %p205_p8  ;;  %s233_s15 = sshll.u32 %s2679_s14, 4  ;;  %s2786_s15 = int_to_ptr.vmem [resolvable:$true] %s233_s15 }
  0x13   : > { %s220_s18 = sshll.u32 %s2680_s17, 4  ;;  %s2681_s19 = smov [#allocation7]   ;;  %s2794_s18 = int_to_ptr.vmem [resolvable:$true] %s220_s18 }
  0x14   : > { %s3426_s13 = scalar_select %p2780_p10, 1, 0 }
  0x15   : > { %p2221_p11 = pneg %p2780_p10  ;;  %s2796_s20 = sshll.u32 %s2681_s19, 4  ;;  %s250_s20 = int_to_ptr.vmem [resolvable:$true] %s2796_s20 }
  0x16   : > { %s2523_s23 = scalar_lea.hbm %s3410_s3, 4096 }
  0x17   : > { %p2790_p12 = pnand %p3415_p9, %p2221_p11  ;;  %p2524_p13 = scmp.ne.s32.totalorder %s3410_s3, %s2523_s23 }
  0x18   : > { %p2530_p3 = scmp.lt.u32.totalorder %s2523_s23, %s3410_s3 }
  0x19   : > { %p2806_p0 = pneg %p2790_p12 }
  0x1b   : > { %p2526_p1 = pnand %p2806_p0, %p2524_p13 }
  0x1d   : > { %p2527_p2 = pneg %p2526_p1 }
  0x1f   : > { %p2532_p4 = pnand %p2530_p3, %p2527_p2 }
  0x21   : > { %2535 = shalt.err (!%p2532_p4)
}
  0x22   : > { %s2536_s19 = scalar_lea.vmem %s2786_s15, 4096  ;;  %p2544_p9 = scmp.lt.s32.totalorder %s2786_s15, %s2786_s15 }
  0x23   : > { %p2537_p7 = scmp.ne.s32.totalorder %s2786_s15, %s2536_s19  ;;  %p2545_p6 = scmp.lt.s32.totalorder %s2536_s19, %s2536_s19 }
  0x25   : > { %p2539_p8 = pnand %p2537_p7, %p2806_p0  ;;  %p2546_p13 = por %p2545_p6, %p2544_p9 }
  0x27   : > { %p2540_p11 = pneg %p2539_p8 }
  0x29   : > { %p2547_p1 = pnand %p2546_p13, %p2540_p11 }
  0x2b   : > { %2550 = shalt.err (!%p2547_p1)
}
  0x2c   : > { %s2682_s21 = smov 256   ;;  %s2683_s22 = smov 16  }
  0x2d   : > { %2227 = dma.hbm_to_vmem [thread:$0]  (!%p2790_p12), %s3410_s3, 4096, %s2786_s15, [#allocation6], %s2682_s21, %s2682_s21, %s2683_s22  }
  0x2e   : > { %s2551_s17 = scalar_lea.hbm %s3409_s2, 2048 }
  0x2f   : > { %p2552_p6 = scmp.ne.s32.totalorder %s3409_s2, %s2551_s17  ;;  %p2558_p3 = scmp.lt.u32.totalorder %s2551_s17, %s3409_s2 }
  0x31   : > { %p2554_p9 = pnand %p2552_p6, %p2806_p0 }
  0x33   : > { %p2555_p2 = pneg %p2554_p9 }
  0x35   : > { %p2560_p4 = pnand %p2558_p3, %p2555_p2 }
  0x37   : > { %2563 = shalt.err (!%p2560_p4)
}
  0x38   : > { %s2564_s15 = scalar_lea.vmem %s2794_s18, 2048  ;;  %p2572_p13 = scmp.lt.s32.totalorder %s2794_s18, %s2794_s18 }
  0x39   : > { %p2565_p7 = scmp.ne.s32.totalorder %s2794_s18, %s2564_s15  ;;  %p2573_p1 = scmp.lt.s32.totalorder %s2564_s15, %s2564_s15 }
  0x3b   : > { %p2567_p8 = pnand %p2565_p7, %p2806_p0  ;;  %p2574_p6 = por %p2573_p1, %p2572_p13 }
  0x3d   : > { %p2568_p11 = pneg %p2567_p8 }
  0x3f   : > { %p2575_p9 = pnand %p2574_p6, %p2568_p11 }
  0x41   : > { %2578 = shalt.err (!%p2575_p9)
}
  0x42   : > { %2224 = dma.hbm_to_vmem [thread:$0]  (!%p2790_p12), %s3409_s2, 2048, %s2794_s18, [#allocation3], %s2682_s21, %s2682_s21, %s2683_s22  }
  0x43   : > { %s2579_s29 = scalar_lea.hbm %s3412_s5, 2048 }
  0x44   : > { %p2580_p2 = scmp.ne.s32.totalorder %s3412_s5, %s2579_s29  ;;  %p2586_p7 = scmp.lt.u32.totalorder %s2579_s29, %s3412_s5 }
  0x46   : > { %p2582_p3 = pnand %p2580_p2, %p2806_p0 }
  0x48   : > { %p2583_p4 = pneg %p2582_p3 }
  0x4a   : > { %p2588_p8 = pnand %p2586_p7, %p2583_p4 }
  0x4c   : > { %2591 = shalt.err (!%p2588_p8)
}
  0x4d   : > { %s2592_s15 = scalar_lea.vmem %s250_s20, 2048  ;;  %p2600_p6 = scmp.lt.s32.totalorder %s250_s20, %s250_s20 }
  0x4e   : > { %p2593_p11 = scmp.ne.s32.totalorder %s250_s20, %s2592_s15  ;;  %p2601_p9 = scmp.lt.s32.totalorder %s2592_s15, %s2592_s15 }
  0x50   : > { %p2595_p13 = pnand %p2593_p11, %p2806_p0  ;;  %p2602_p5 = por %p2601_p9, %p2600_p6 }
  0x52   : > { %p2596_p1 = pneg %p2595_p13 }
  0x54   : > { %p2603_p10 = pnand %p2602_p5, %p2596_p1 }
  0x56   : > { %2606 = shalt.err (!%p2603_p10)
}
  0x57   : > { %s2684_s18 = smov 128   ;;  %s2685_s21 = smov 8  }
  0x58   : > { %2230 = dma.hbm_to_vmem [thread:$0]  (!%p2790_p12), %s3412_s5, 2048, %s250_s20, [#allocation6], %s2684_s18, %s2684_s18, %s2685_s21  }
  0x59   : > { %p3429_p2 = scmp.ne.s32.totalorder %s3426_s13, 0 }
  0x5a   : > { %p3430_p3 = scmp.eq.s32.totalorder (!%p3429_p2), %s2752_s28, 0 }
  0x5b   : > { %275 = sbr.rel (%p3429_p2) target bundleno = 3140 (0xc44), region = 48 }
  0x62   : > { %2652 = dma.done.wait (%p3430_p3), [#allocation3], 2048   ;;  %p3431_p0 = pmov %p3430_p3 }
  0x64   : > { %2654 = vsyncadd (%p3431_p0), [#allocation3], 4294965248  ;;  %p3432_p5 = pmov %p3431_p0 }
  0x65   : > { %p3433_p10 = pmov %p3431_p0 }
  0x66   : > { %2656 = dma.done.wait (%p3432_p5), [#allocation6], 6144  }
  0x67   : > { %2658 = vsyncadd (%p3433_p10), [#allocation6], 4294961152  ;;  %p314_p4 = scmp.lt.s32.totalorder %s2752_s28, 1  ;;  %v2686_v0 = vmov 0   ;;  %v2687_v1 = vmov 0.0   ;;  %v2286_v3 = vld [vmem:[%s3408_s1] sm:$0xff]   ;;  %v320_v15 = vlaneseq }
  0x68   : > { %2285 = vset.pattern.permute.xlu0 %v2686_v0  ;;  %2140 = vmatprep.subr.bf16.mxu1 %v2687_v1  ;;  %vm348_vm0 = vcmask 1046528   ;;  %v2287_v4 = vld [vmem:[%s3408_s1 + $0x8] sm:$0x7f]   ;;  %vm2688_vm1 = vmmov 0   ;;  %vm344_vm3 = vcmask 244736   ;;  %vm511_vm4 = vcmask 523264  }
  0x69   : > { %s315_s13 = scalar_select %p314_p4, %s2752_s28, 1  ;;  %547 = vmatprep.mubr.bf16.mxu0 %v2686_v0  ;;  %2141 = vmatpush3.bf16.msra.mxu1 %v2286_v3  ;;  %v350_v5 = vsel %vm348_vm0, %v2287_v4, 0  ;;  %v2897_v6 = vld [vmem:[#allocation5 + $0x4] ss:$16 sps:$4 sm:$0xff]   ;;  %v2302_v8 = vld [vmem:[#allocation2] ss:$16 sps:$4 sm:$0xff]  }
  0x6a   : > { %2142 = vmatprep.subr.bf16.mxu1 %v2687_v1  ;;  %2144 = vmatprep.mubr.msk.bf16.mxu1 %vm2688_vm1, %v2687_v1  ;;  %v2299_v7 = vld [vmem:[#allocation2 + $0x4] ss:$16 sps:$4 sm:$0xff]   ;;  %v2308_v10 = vld [vmem:[#allocation2 + $0x20] ss:$16 sps:$4 sm:$0xff]   ;;  %v321_v16 = vand.u32 127, %v320_v15  ;;  %vm1804_vm5 = vcmask 1040384  }
  0x6b   : > { %s2036_s16 = sshll.u32 %s315_s13, 3  ;;  %515 = vmatprep.subr.bf16.mxu0 %v2299_v7  ;;  %v2305_v9 = vld [vmem:[#allocation2 + $0x24] ss:$16 sps:$4 sm:$0xff]   ;;  %v2314_v12 = vld [vmem:[#allocation2 + $0x40] ss:$16 sps:$4 sm:$0xff]   ;;  %v412_v7 = vshrl.u32 %v320_v15, 7 }
  0x6c   : > { %s317_s30 = scalar_lea.vmem %s3407_s0, %s2036_s16  ;;  %516 = vmatpush1.bf16.msra.mxu0 %v2302_v8  ;;  %v2311_v11 = vld [vmem:[#allocation2 + $0x44] ss:$16 sps:$4 sm:$0xff]   ;;  %v2320_v14 = vld [vmem:[#allocation2 + $0x60] ss:$16 sps:$4 sm:$0xff]   ;;  %v2325_v34 = vld [vmem:[#allocation2 + $0xc] ss:$16 sps:$4 sm:$0xff]  }
  0x6d   : > { %v319_v2 = vld [vmem:[%s317_s30] sm:$0xff]  ;;  %2143 = vmatpush3.bf16.msra.mxu1 %v350_v5  ;;  %517 = vmatprep.subr.bf16.mxu0 %v2305_v9  ;;  %v2317_v13 = vld [vmem:[#allocation2 + $0x64] ss:$16 sps:$4 sm:$0xff]   ;;  %v2902_v19 = vld [vmem:[#allocation5] ss:$16 sps:$4 sm:$0xff]   ;;  %v413_v8 = vsub.s32 0, %v412_v7 }
  0x6e   : > { %323 = vperm.xlu0 %2285, %v319_v2   ;;  %789 = vmatprep.subr.bf16.mxu1 %v2897_v6  ;;  %v2904_v21 = vld [vmem:[#allocation5 + $0x24] ss:$16 sps:$4 sm:$0xff]   ;;  %v2907_v22 = vld [vmem:[#allocation5 + $0x20] ss:$16 sps:$4 sm:$0xff]   ;;  %v2323_v37 = vld [vmem:[#allocation2 + $0x8] ss:$16 sps:$4 sm:$0xff]  }
  0x6f   : > { %v2911_v23 = vld [vmem:[#allocation5 + $0x44] ss:$16 sps:$4 sm:$0xff]   ;;  %v2914_v24 = vld [vmem:[#allocation5 + $0x40] ss:$16 sps:$4 sm:$0xff]   ;;  %v2329_v40 = vld [vmem:[#allocation2 + $0x2c] ss:$16 sps:$4 sm:$0xff]  }
  0x70   : > { %518 = vmatpush1.bf16.msra.mxu0 %v2308_v10  ;;  %v2917_v25 = vld [vmem:[#allocation5 + $0x64] ss:$16 sps:$4 sm:$0xff]   ;;  %v2920_v26 = vld [vmem:[#allocation5 + $0x60] ss:$16 sps:$4 sm:$0xff]   ;;  %v2327_v43 = vld [vmem:[#allocation2 + $0x28] ss:$16 sps:$4 sm:$0xff]  }
  0x71   : > { %519 = vmatprep.subr.bf16.mxu0 %v2311_v11  ;;  %v2923_v27 = vld [vmem:[#allocation5 + $0x84] ss:$16 sps:$4 sm:$0xff]   ;;  %v2926_v28 = vld [vmem:[#allocation5 + $0x80] ss:$16 sps:$4 sm:$0xff]   ;;  %v2332_v44 = vld [vmem:[#allocation2 + $0x4c] ss:$16 sps:$4 sm:$0xff]  }
  0x72   : > { %v2929_v29 = vld [vmem:[#allocation5 + $0xa4] ss:$16 sps:$4 sm:$0xff]   ;;  %v2932_v30 = vld [vmem:[#allocation5 + $0xa0] ss:$16 sps:$4 sm:$0xff]   ;;  %v2330_v45 = vld [vmem:[#allocation2 + $0x48] ss:$16 sps:$4 sm:$0xff]  }
  0x73   : > { %v2935_v31 = vld [vmem:[#allocation5 + $0xc4] ss:$16 sps:$4 sm:$0xff]   ;;  %v2938_v32 = vld [vmem:[#allocation5 + $0xc0] ss:$16 sps:$4 sm:$0xff]   ;;  %v2335_v46 = vld [vmem:[#allocation2 + $0x6c] ss:$16 sps:$4 sm:$0xff]  }
  0x74   : > { %520 = vmatpush1.bf16.msra.mxu0 %v2314_v12  ;;  %v2942_v33 = vld [vmem:[#allocation5 + $0xe4] ss:$16 sps:$4 sm:$0xff]   ;;  %v2944_v35 = vld [vmem:[#allocation5 + $0xe0] ss:$16 sps:$4 sm:$0xff]   ;;  %v2333_v47 = vld [vmem:[#allocation2 + $0x68] ss:$16 sps:$4 sm:$0xff]  }
  0x75   : > { %521 = vmatprep.subr.bf16.mxu0 %v2317_v13  ;;  %v2969_v48 = vld [vmem:[#allocation5 + $0xc] ss:$16 sps:$4 sm:$0xff]   ;;  %v2971_v49 = vld [vmem:[#allocation5 + $0x8] ss:$16 sps:$4 sm:$0xff]   ;;  %v417_v10 = vsub.s32 1, %v412_v7  ;;  %vm1806_vm6 = vcmask 1041408  }
  0x76   : > { %v2974_v50 = vld [vmem:[#allocation5 + $0x2c] ss:$16 sps:$4 sm:$0xff]   ;;  %v2978_v51 = vld [vmem:[#allocation5 + $0x28] ss:$16 sps:$4 sm:$0xff]   ;;  %vm1808_vm7 = vcmask 1042432   ;;  %vm1810_vm8 = vcmask 1043456  }
  0x77   : > { %v2982_v52 = vld [vmem:[#allocation5 + $0x4c] ss:$16 sps:$4 sm:$0xff]   ;;  %v2985_v53 = vld [vmem:[#allocation5 + $0x48] ss:$16 sps:$4 sm:$0xff]   ;;  %vm1812_vm9 = vcmask 1044480   ;;  %vm1814_vm10 = vcmask 1045504  }
  0x78   : > { %522 = vmatpush1.bf16.msra.mxu0 %v2320_v14  ;;  %v2988_v54 = vld [vmem:[#allocation5 + $0x6c] ss:$16 sps:$4 sm:$0xff]   ;;  %v2991_v55 = vld [vmem:[#allocation5 + $0x68] ss:$16 sps:$4 sm:$0xff]   ;;  %s311_s18 = sand.u32 1, %s2669_s25   ;;  %s2117_s22 = sshll.u32 %s2752_s28, 7 }
  0x79   : > { %556 = vmatprep.subr.bf16.mxu0 %v2325_v34  ;;  %v2994_v56 = vld [vmem:[#allocation5 + $0x8c] ss:$16 sps:$4 sm:$0xff]   ;;  %v2997_v57 = vld [vmem:[#allocation5 + $0x88] ss:$16 sps:$4 sm:$0xff]   ;;  %v421_v34 = vsub.s32 2, %v412_v7  ;;  %s2035_s21 = sshll.u32 %s311_s18, 3  ;;  %s3365_s9 = scalar_lea.hbm %s3414_s7, %s2117_s22 }
  0x7a   : > { %v3000_v58 = vld [vmem:[#allocation5 + $0xac] ss:$16 sps:$4 sm:$0xff]   ;;  %v3003_v59 = vld [vmem:[#allocation5 + $0xa8] ss:$16 sps:$4 sm:$0xff]   ;;  %s313_s26 = scalar_lea.vmem [#allocation8], %s2035_s21  ;;  %s1922_s30 = scalar_lea.sflag [#allocation4], %s311_s18 }
  0x7b   : > { %v3006_v60 = vld [vmem:[#allocation5 + $0xcc] ss:$16 sps:$4 sm:$0xff]   ;;  %v3009_v61 = vld [vmem:[#allocation5 + $0xc8] ss:$16 sps:$4 sm:$0xff]   ;;  %s1935_s13 = sshll.u32 %s313_s26, 4  ;;  %p3434_p7 = scmp.ne.s32.totalorder %s3424_s11, 0  ;;  %s3367_s13 = int_to_ptr.vmem [resolvable:$true] %s1935_s13 }
  0x7c   : > { %v3012_v62 = vld [vmem:[#allocation5 + $0xec] ss:$16 sps:$4 sm:$0xff]   ;;  %v3015_v63 = vld [vmem:[#allocation5 + $0xe8] ss:$16 sps:$4 sm:$0xff]   ;;  %s2607_s10 = scalar_lea.vmem %s3367_s13, 128  ;;  %s2690_s28 = smov [#allocation8]  }
  0x7d   : > { %v409_v9 = vld [vmem:[%s3411_s4] sm:$0xf]  ;;  %p2608_p12 = scmp.ne.s32.totalorder %s3367_s13, %s2607_s10  ;;  %s2611_s23 = sshll.u32 %s2690_s28, 4  ;;  %s2612_s23 = int_to_ptr.vmem [resolvable:$false] %s2611_s23 }
  0x7e   : > { %v414_v11 = vrot.slane %v409_v9, %v413_v8  ;;  %v418_v12 = vrot.slane %v409_v9, %v417_v10  ;;  %s2613_s29 = scalar_lea.vmem %s2612_s23, 256  ;;  %p2614_p13 = scmp.lt.s32.totalorder %s3367_s13, %s2612_s23 }
  0x7f   : > { %p2609_p8 = pnand %p2608_p12, %p3434_p7  ;;  %p2615_p1 = scmp.lt.s32.totalorder %s2613_s29, %s2607_s10 }
  0x81   : > { %p2610_p11 = pneg %p2609_p8  ;;  %p2616_p6 = por %p2615_p1, %p2614_p13 }
  0x83   : > { %p2617_p9 = pnand %p2616_p6, %p2610_p11 }
  0xed   : > { %v324_v17 = vpop.permute.xlu0 %323 }
  0xee   : > { %vm325_vm2 = vcmp.eq.s32.totalorder %v324_v17, %v321_v16 }
  0xef   : > { %v2037_v18 = vsel %vm325_vm2, 1.0, %v2687_v1 }
  0xf0   : > { %v328_v20 = vpack.c.bf16 %v2037_v18, %v2037_v18 }
  0xf2   : > { %2145 = vmatmul.mubr.msk.bf16.vlgmr.msra.gmra.mrb[0].mxu1 %vm344_vm3, %v328_v20 }
  0xf3   : > { %790 = vmatpush1.bf16.msra.mxu1 %v2902_v19  ;;  %821 = vmatprep.mubr.bf16.mxu1 %v2686_v0 }
  0xf4   : > { %791 = vmatprep.subr.bf16.mxu1 %v2904_v21 }
  0xf7   : > { %792 = vmatpush1.bf16.msra.mxu1 %v2907_v22 }
  0xf8   : > { %793 = vmatprep.subr.bf16.mxu1 %v2911_v23 }
  0xfb   : > { %794 = vmatpush1.bf16.msra.mxu1 %v2914_v24 }
  0xfc   : > { %795 = vmatprep.subr.bf16.mxu1 %v2917_v25 }
  0xff   : > { %796 = vmatpush1.bf16.msra.mxu1 %v2920_v26 }
 0x100   : > { %797 = vmatprep.subr.bf16.mxu1 %v2923_v27 }
 0x103   : > { %798 = vmatpush1.bf16.msra.mxu1 %v2926_v28 }
 0x104   : > { %799 = vmatprep.subr.bf16.mxu1 %v2929_v29 }
 0x107   : > { %800 = vmatpush1.bf16.msra.mxu1 %v2932_v30 }
 0x108   : > { %801 = vmatprep.subr.bf16.mxu1 %v2935_v31 }
 0x10b   : > { %802 = vmatpush1.bf16.msra.mxu1 %v2938_v32 }
 0x10c   : > { %803 = vmatprep.subr.bf16.mxu1 %v2942_v33 }
 0x10f   : > { %804 = vmatpush1.bf16.msra.mxu1 %v2944_v35 }
 0x110   : > { %900 = vmatprep.subr.bf16.mxu1 %v2897_v6 }
 0x112   : > { %822 = vmatmul.mubr.bf16.vlgmr.msra.gmra.mrb[4].mxu1 %v2686_v0 }
 0x113   : > { %901 = vmatpush1.bf16.msra.mxu1 %v2902_v19  ;;  %932 = vmatprep.mubr.bf16.mxu1 %v2686_v0 }
 0x114   : > { %902 = vmatprep.subr.bf16.mxu1 %v2904_v21 }
 0x117   : > { %903 = vmatpush1.bf16.msra.mxu1 %v2907_v22 }
 0x118   : > { %904 = vmatprep.subr.bf16.mxu1 %v2911_v23 }
 0x11b   : > { %905 = vmatpush1.bf16.msra.mxu1 %v2914_v24 }
 0x11c   : > { %906 = vmatprep.subr.bf16.mxu1 %v2917_v25 }
 0x11f   : > { %907 = vmatpush1.bf16.msra.mxu1 %v2920_v26 }
 0x120   : > { %908 = vmatprep.subr.bf16.mxu1 %v2923_v27 }
 0x123   : > { %909 = vmatpush1.bf16.msra.mxu1 %v2926_v28 }
 0x124   : > { %910 = vmatprep.subr.bf16.mxu1 %v2929_v29 }
 0x127   : > { %911 = vmatpush1.bf16.msra.mxu1 %v2932_v30 }
 0x128   : > { %912 = vmatprep.subr.bf16.mxu1 %v2935_v31 }
 0x12b   : > { %913 = vmatpush1.bf16.msra.mxu1 %v2938_v32 }
 0x12c   : > { %914 = vmatprep.subr.bf16.mxu1 %v2942_v33 }
 0x12f   : > { %915 = vmatpush1.bf16.msra.mxu1 %v2944_v35 }
 0x130   : > { %1030 = vmatprep.subr.bf16.mxu1 %v2897_v6 }
 0x1c5   : > { %v386_v36 = vpop.f32.mrb[0].mxu1 }
 0x1c6   : > { %v392_v38 = vpack.c.bf16 %v386_v36, %v386_v36  ;;  %v2146_v39 = vpop.f32.mrb[1].mxu1  ;;  %v425_v36 = vsub.s32 3, %v412_v7 }
 0x1c7   : > { %v389_v41 = vpop.f32.mrb[2].mxu1 }
 0x1c8   : > { %v2147_v42 = vpop.f32.mrb[3].mxu1  ;;  %2057 = vmatmul.mubr.msk.bf16.vlgmr.msra.gmra.mrb[0].mxu0 %vm511_vm4, %v392_v38  ;;  %v426_v15 = vrot.slane %v409_v9, %v425_v36 }
 0x1c9   : > { %557 = vmatpush1.bf16.msra.mxu0 %v2323_v37  ;;  %588 = vmatprep.mubr.bf16.mxu0 %v2686_v0  ;;  %v422_v37 = vrot.slane %v409_v9, %v421_v34 }
 0x1ca   : > { %558 = vmatprep.subr.bf16.mxu0 %v2329_v40 }
 0x1cd   : > { %559 = vmatpush1.bf16.msra.mxu0 %v2327_v43 }
 0x1ce   : > { %560 = vmatprep.subr.bf16.mxu0 %v2332_v44 }
 0x1d1   : > { %561 = vmatpush1.bf16.msra.mxu0 %v2330_v45 }
 0x1d2   : > { %562 = vmatprep.subr.bf16.mxu0 %v2335_v46 }
 0x1d5   : > { %563 = vmatpush1.bf16.msra.mxu0 %v2333_v47 }
 0x1d6   : > { %830 = vmatprep.subr.bf16.mxu0 %v2969_v48 }
 0x1d8   : > { %2058 = vmatmul.mubr.msk.bf16.vlgmr.msra.gmra.mrb[4].mxu0 %vm511_vm4, %v392_v38 }
 0x1d9   : > { %831 = vmatpush1.bf16.msra.mxu0 %v2971_v49  ;;  %862 = vmatprep.mubr.bf16.mxu0 %v2686_v0 }
 0x1da   : > { %832 = vmatprep.subr.bf16.mxu0 %v2974_v50 }
 0x1dd   : > { %833 = vmatpush1.bf16.msra.mxu0 %v2978_v51 }
 0x1de   : > { %834 = vmatprep.subr.bf16.mxu0 %v2982_v52 }
 0x1e1   : > { %835 = vmatpush1.bf16.msra.mxu0 %v2985_v53 }
 0x1e2   : > { %836 = vmatprep.subr.bf16.mxu0 %v2988_v54 }
 0x1e5   : > { %837 = vmatpush1.bf16.msra.mxu0 %v2991_v55  ;;  %v823_v2 = vpop.f32.mrb[4].mxu1 }
 0x1e6   : > { %838 = vmatprep.subr.bf16.mxu0 %v2994_v56  ;;  %v825_v3 = vpop.f32.mrb[5].mxu1 }
 0x1e7   : > { %v827_v4 = vpop.f32.mrb[6].mxu1 }
 0x1e8   : > { %v828_v5 = vpop.f32.mrb[7].mxu1 }
 0x1e9   : > { %839 = vmatpush1.bf16.msra.mxu0 %v2997_v57 }
 0x1ea   : > { %840 = vmatprep.subr.bf16.mxu0 %v3000_v58 }
 0x1ed   : > { %841 = vmatpush1.bf16.msra.mxu0 %v3003_v59 }
 0x1ee   : > { %842 = vmatprep.subr.bf16.mxu0 %v3006_v60 }
 0x1f1   : > { %843 = vmatpush1.bf16.msra.mxu0 %v3009_v61 }
 0x1f2   : > { %844 = vmatprep.subr.bf16.mxu0 %v3012_v62 }
 0x1f5   : > { %845 = vmatpush1.bf16.msra.mxu0 %v3015_v63 }
 0x1f6   : > { %941 = vmatprep.subr.bf16.mxu0 %v2969_v48 }
 0x1f8   : > { %863 = vmatmul.mubr.bf16.vlgmr.msra.gmra.mrb[8].mxu0 %v2686_v0 }
 0x1f9   : > { %942 = vmatpush1.bf16.msra.mxu0 %v2971_v49  ;;  %973 = vmatprep.mubr.bf16.mxu0 %v2686_v0 }
 0x1fa   : > { %943 = vmatprep.subr.bf16.mxu0 %v2974_v50 }
 0x1fd   : > { %944 = vmatpush1.bf16.msra.mxu0 %v2978_v51 }
 0x1fe   : > { %945 = vmatprep.subr.bf16.mxu0 %v2982_v52 }
 0x201   : > { %946 = vmatpush1.bf16.msra.mxu0 %v2985_v53 }
 0x202   : > { %947 = vmatprep.subr.bf16.mxu0 %v2988_v54 }
 0x205   : > { %948 = vmatpush1.bf16.msra.mxu0 %v2991_v55 }
 0x206   : > { %949 = vmatprep.subr.bf16.mxu0 %v2994_v56 }
 0x209   : > { %950 = vmatpush1.bf16.msra.mxu0 %v2997_v57 }
 0x20a   : > { %951 = vmatprep.subr.bf16.mxu0 %v3000_v58 }
 0x20d   : > { %952 = vmatpush1.bf16.msra.mxu0 %v3003_v59 }
 0x20e   : > { %953 = vmatprep.subr.bf16.mxu0 %v3006_v60 }
 0x211   : > { %954 = vmatpush1.bf16.msra.mxu0 %v3009_v61 }
 0x212   : > { %955 = vmatprep.subr.bf16.mxu0 %v3012_v62 }
 0x215   : > { %956 = vmatpush1.bf16.msra.mxu0 %v3015_v63 }
 0x216   : > { %1071 = vmatprep.subr.bf16.mxu0 %v2969_v48 }
 0x29b   : > { %v549_v13 = vpop.f32.mrb[0].mxu0 }
 0x29c   : > { %v3042_v14 = vadd.f32 %v549_v13, %v414_v11  ;;  %v551_v16 = vpop.f32.mrb[1].mxu0 }
 0x29d   : > { %v3044_v17 = vadd.f32 %v551_v16, %v418_v12  ;;  %v553_v18 = vpop.f32.mrb[2].mxu0 }
 0x29e   : > { %v554_v20 = vpop.f32.mrb[3].mxu0  ;;  %v871_v45 = vadd.f32 %v823_v2, %v3042_v14 }
 0x29f   : > { %v872_v44 = vadd.f32 %v825_v3, %v3044_v17 }
 0x2a0   : > { %v2091_v47 = vmul.f32 -1.442695, %v871_v45 }
 0x2a1   : > { %v2092_v46 = vmul.f32 -1.442695, %v872_v44 }
 0x2a3   : > { %2360 = vpow2.f32 %v2092_v46 }
 0x2a4   : > { %2362 = vpow2.f32 %v2091_v47 }
 0x2ab   : > { %v590_v38 = vpop.f32.mrb[4].mxu0 }
 0x2ac   : > { %v3046_v39 = vadd.f32 %v590_v38, %v422_v37  ;;  %v592_v40 = vpop.f32.mrb[5].mxu0 }
 0x2ad   : > { %v3048_v41 = vadd.f32 %v592_v40, %v426_v15  ;;  %v594_v42 = vpop.f32.mrb[6].mxu0  ;;  %v2361_v4 = vpop.eup %2360 }
 0x2ae   : > { %v595_v43 = vpop.f32.mrb[7].mxu0  ;;  %v2363_v5 = vpop.eup %2362  ;;  %v885_v7 = vadd.f32 1.0, %v2361_v4 }
 0x2af   : > { %v884_v8 = vadd.f32 1.0, %v2363_v5 }
 0x2b0   : > { %2364 = vrcp.f32 %v885_v7 }
 0x2b1   : > { %2366 = vrcp.f32 %v884_v8 }
 0x2ba   : > { %v2365_v2 = vpop.eup %2364 }
 0x2bb   : > { %v2367_v18 = vpop.eup %2366  ;;  %v894_v36 = vmul.f32 0.0, %v2365_v2 }
 0x2cb   : > { %v864_v9 = vpop.f32.mrb[8].mxu0 }
 0x2cc   : > { %v873_v10 = vadd.f32 %v864_v9, %v3046_v39  ;;  %v866_v11 = vpop.f32.mrb[9].mxu0 }
 0x2cd   : > { %v874_v12 = vadd.f32 %v866_v11, %v3048_v41  ;;  %v868_v13 = vpop.f32.mrb[10].mxu0 }
 0x2ce   : > { %v2093_v3 = vmul.f32 -1.442695, %v873_v10  ;;  %v869_v16 = vpop.f32.mrb[11].mxu0 }
 0x2cf   : > { %2368 = vtanh.f32 %v874_v12 }
 0x2d0   : > { %2370 = vpow2.f32 %v2093_v3 }
 0x2d9   : > { %v2369_v20 = vpop.eup %2368 }
 0x2da   : > { %v2371_v34 = vpop.eup %2370  ;;  %v895_v37 = vmul.f32 %v2369_v20, %v2367_v18 }
 0x2db   : > { %v886_v15 = vadd.f32 1.0, %v2371_v34 }
 0x2dc   : > { %v3054_v38 = vadd.f32 %v895_v37, %v894_v36 }
 0x2dd   : > { %2372 = vrcp.f32 %v886_v15 }
 0x2de   : > { %2374 = vtanh.f32 %v3054_v38 }
 0x2e7   : > { %v2373_v40 = vpop.eup %2372 }
 0x2e8   : > { %v2375_v42 = vpop.eup %2374 }
 0x2e9   : > { %v3057_v43 = vmul.f32 %v2375_v42, %v2373_v40 }
 0x2eb   : > { %v899_v44 = vpack.c.bf16 %v3057_v43, %v3057_v43 }
 0x2ed   : > { %933 = vmatmul.mubr.bf16.vlgmr.msra.gmra.mrb[8].mxu1 %v899_v44  ;;  %974 = vmatmul.mubr.bf16.vlgmr.msra.gmra.mrb[12].mxu0 %v899_v44 }
 0x2ee   : > { %1031 = vmatpush1.bf16.msra.mxu1 %v2902_v19  ;;  %1072 = vmatpush1.bf16.msra.mxu0 %v2971_v49 }
 0x2ef   : > { %1032 = vmatprep.subr.bf16.mxu1 %v2904_v21  ;;  %1073 = vmatprep.subr.bf16.mxu0 %v2974_v50 }
 0x2f0   : > { %1062 = vmatprep.mubr.bf16.mxu1 %v2686_v0  ;;  %1103 = vmatprep.mubr.bf16.mxu0 %v2686_v0 }
 0x2f2   : > { %1033 = vmatpush1.bf16.msra.mxu1 %v2907_v22  ;;  %1074 = vmatpush1.bf16.msra.mxu0 %v2978_v51 }
 0x2f3   : > { %1034 = vmatprep.subr.bf16.mxu1 %v2911_v23  ;;  %1075 = vmatprep.subr.bf16.mxu0 %v2982_v52 }
 0x2f6   : > { %1035 = vmatpush1.bf16.msra.mxu1 %v2914_v24  ;;  %1076 = vmatpush1.bf16.msra.mxu0 %v2985_v53 }
 0x2f7   : > { %1036 = vmatprep.subr.bf16.mxu1 %v2917_v25  ;;  %1077 = vmatprep.subr.bf16.mxu0 %v2988_v54 }
 0x2fa   : > { %1037 = vmatpush1.bf16.msra.mxu1 %v2920_v26  ;;  %1078 = vmatpush1.bf16.msra.mxu0 %v2991_v55 }
 0x2fb   : > { %1038 = vmatprep.subr.bf16.mxu1 %v2923_v27  ;;  %1079 = vmatprep.subr.bf16.mxu0 %v2994_v56 }
 0x2fe   : > { %1039 = vmatpush1.bf16.msra.mxu1 %v2926_v28  ;;  %1080 = vmatpush1.bf16.msra.mxu0 %v2997_v57 }
 0x2ff   : > { %1040 = vmatprep.subr.bf16.mxu1 %v2929_v29  ;;  %1081 = vmatprep.subr.bf16.mxu0 %v3000_v58 }
 0x302   : > { %1041 = vmatpush1.bf16.msra.mxu1 %v2932_v30  ;;  %1082 = vmatpush1.bf16.msra.mxu0 %v3003_v59 }
 0x303   : > { %1042 = vmatprep.subr.bf16.mxu1 %v2935_v31  ;;  %1083 = vmatprep.subr.bf16.mxu0 %v3006_v60 }
 0x306   : > { %1043 = vmatpush1.bf16.msra.mxu1 %v2938_v32  ;;  %1084 = vmatpush1.bf16.msra.mxu0 %v3009_v61 }
 0x307   : > { %1044 = vmatprep.subr.bf16.mxu1 %v2942_v33  ;;  %1085 = vmatprep.subr.bf16.mxu0 %v3012_v62 }
 0x30a   : > { %1045 = vmatpush1.bf16.msra.mxu1 %v2944_v35  ;;  %1086 = vmatpush1.bf16.msra.mxu0 %v3015_v63 }
 0x30b   : > { %1159 = vmatprep.subr.bf16.mxu1 %v2897_v6  ;;  %1200 = vmatprep.subr.bf16.mxu0 %v2969_v48 }
 0x3c0   : > { %v934_v45 = vpop.f32.mrb[8].mxu1  ;;  %v975_v46 = vpop.f32.mrb[12].mxu0 }
 0x3c1   : > { %v986_v47 = vrot.slane %v934_v45, 7  ;;  %v936_v4 = vpop.f32.mrb[9].mxu1  ;;  %v977_v5 = vpop.f32.mrb[13].mxu0  ;;  %v988_v2 = vrot.slane %v975_v46, 7  ;;  %v1018_v46 = vrot.slane %v3054_v38, 7 }
 0x3c2   : > { %v987_v7 = vrot.slane %v936_v4, 7  ;;  %v938_v8 = vpop.f32.mrb[10].mxu1  ;;  %v979_v9 = vpop.f32.mrb[14].mxu0  ;;  %v989_v18 = vrot.slane %v977_v5, 7 }
 0x3c3   : > { %v994_v10 = vadd.f32 %v986_v47, %v3042_v14  ;;  %v939_v11 = vpop.f32.mrb[11].mxu1  ;;  %v980_v12 = vpop.f32.mrb[15].mxu0  ;;  %v996_v20 = vadd.f32 %v988_v2, %v3046_v39 }
 0x3c4   : > { %v995_v13 = vadd.f32 %v987_v7, %v3044_v17  ;;  %v997_v34 = vadd.f32 %v989_v18, %v3048_v41 }
 0x3c5   : > { %v2094_v3 = vmul.f32 -1.442695, %v994_v10  ;;  %v2096_v36 = vmul.f32 -1.442695, %v996_v20 }
 0x3c6   : > { %v2095_v16 = vmul.f32 -1.442695, %v995_v13 }
 0x3c7   : > { %2376 = vpow2.f32 %v2094_v3 }
 0x3c8   : > { %2378 = vpow2.f32 %v2095_v16 }
 0x3c9   : > { %2380 = vtanh.f32 %v997_v34 }
 0x3ca   : > { %2382 = vpow2.f32 %v2096_v36 }
 0x3d1   : > { %v2377_v37 = vpop.eup %2376 }
 0x3d2   : > { %v1007_v15 = vadd.f32 1.0, %v2377_v37  ;;  %v2379_v40 = vpop.eup %2378 }
 0x3d3   : > { %v1008_v42 = vadd.f32 1.0, %v2379_v40  ;;  %v2381_v44 = vpop.eup %2380 }
 0x3d4   : > { %2384 = vrcp.f32 %v1007_v15  ;;  %v2383_v45 = vpop.eup %2382 }
 0x3d5   : > { %2386 = vrcp.f32 %v1008_v42  ;;  %v1009_v7 = vadd.f32 1.0, %v2383_v45 }
 0x3d7   : > { %2388 = vrcp.f32 %v1009_v7 }
 0x3de   : > { %v2385_v47 = vpop.eup %2384 }
 0x3df   : > { %v1021_v4 = vmul.f32 %v2385_v47, %v2381_v44  ;;  %v2387_v5 = vpop.eup %2386 }
 0x3e0   : > { %v1020_v8 = vmul.f32 %v2387_v5, %v1018_v46 }
 0x3e1   : > { %v2389_v10 = vpop.eup %2388 }
 0x3e2   : > { %v3100_v9 = vadd.f32 %v1021_v4, %v1020_v8 }
 0x3e4   : > { %2390 = vtanh.f32 %v3100_v9 }
 0x3ee   : > { %v2391_v11 = vpop.eup %2390 }
 0x3ef   : > { %v3103_v12 = vmul.f32 %v2391_v11, %v2389_v10 }
 0x3f1   : > { %v1025_v13 = vpack.c.bf16 %v3103_v12, %v3103_v12 }
 0x3f3   : > { %v1027_v3 = vshrl.u32 %v1025_v13, 16 }
 0x3f5   : > { %1063 = vmatmul.mubr.bf16.vlgmr.msra.gmra.mrb[12].mxu1 %v1027_v3  ;;  %1104 = vmatmul.mubr.bf16.vlgmr.msra.gmra.mrb[16].mxu0 %v1027_v3 }
 0x3f6   : > { %1160 = vmatpush1.bf16.msra.mxu1 %v2902_v19  ;;  %1201 = vmatpush1.bf16.msra.mxu0 %v2971_v49 }
 0x3f7   : > { %1161 = vmatprep.subr.bf16.mxu1 %v2904_v21  ;;  %1202 = vmatprep.subr.bf16.mxu0 %v2974_v50 }
 0x3f8   : > { %1191 = vmatprep.mubr.bf16.mxu1 %v2686_v0  ;;  %1232 = vmatprep.mubr.bf16.mxu0 %v2686_v0 }
 0x3fa   : > { %1162 = vmatpush1.bf16.msra.mxu1 %v2907_v22  ;;  %1203 = vmatpush1.bf16.msra.mxu0 %v2978_v51 }
 0x3fb   : > { %1163 = vmatprep.subr.bf16.mxu1 %v2911_v23  ;;  %1204 = vmatprep.subr.bf16.mxu0 %v2982_v52 }
 0x3fe   : > { %1164 = vmatpush1.bf16.msra.mxu1 %v2914_v24  ;;  %1205 = vmatpush1.bf16.msra.mxu0 %v2985_v53 }
 0x3ff   : > { %1165 = vmatprep.subr.bf16.mxu1 %v2917_v25  ;;  %1206 = vmatprep.subr.bf16.mxu0 %v2988_v54 }
 0x402   : > { %1166 = vmatpush1.bf16.msra.mxu1 %v2920_v26  ;;  %1207 = vmatpush1.bf16.msra.mxu0 %v2991_v55 }
 0x403   : > { %1167 = vmatprep.subr.bf16.mxu1 %v2923_v27  ;;  %1208 = vmatprep.subr.bf16.mxu0 %v2994_v56 }
 0x406   : > { %1168 = vmatpush1.bf16.msra.mxu1 %v2926_v28  ;;  %1209 = vmatpush1.bf16.msra.mxu0 %v2997_v57 }
 0x407   : > { %1169 = vmatprep.subr.bf16.mxu1 %v2929_v29  ;;  %1210 = vmatprep.subr.bf16.mxu0 %v3000_v58 }
 0x40a   : > { %1170 = vmatpush1.bf16.msra.mxu1 %v2932_v30  ;;  %1211 = vmatpush1.bf16.msra.mxu0 %v3003_v59 }
 0x40b   : > { %1171 = vmatprep.subr.bf16.mxu1 %v2935_v31  ;;  %1212 = vmatprep.subr.bf16.mxu0 %v3006_v60 }
 0x40e   : > { %1172 = vmatpush1.bf16.msra.mxu1 %v2938_v32  ;;  %1213 = vmatpush1.bf16.msra.mxu0 %v3009_v61 }
 0x40f   : > { %1173 = vmatprep.subr.bf16.mxu1 %v2942_v33  ;;  %1214 = vmatprep.subr.bf16.mxu0 %v3012_v62 }
 0x412   : > { %1174 = vmatpush1.bf16.msra.mxu1 %v2944_v35  ;;  %1215 = vmatpush1.bf16.msra.mxu0 %v3015_v63 }
 0x413   : > { %1290 = vmatprep.subr.bf16.mxu1 %v2897_v6  ;;  %1331 = vmatprep.subr.bf16.mxu0 %v2969_v48 }
 0x4c8   : > { %v1064_v38 = vpop.f32.mrb[12].mxu1  ;;  %v1105_v16 = vpop.f32.mrb[16].mxu0 }
 0x4c9   : > { %v1116_v2 = vrot.slane %v1064_v38, 6  ;;  %v1066_v18 = vpop.f32.mrb[13].mxu1  ;;  %v1107_v20 = vpop.f32.mrb[17].mxu0  ;;  %v1118_v46 = vrot.slane %v1105_v16, 6  ;;  %v1148_v16 = vrot.slane %v3100_v9, 7 }
 0x4ca   : > { %v1117_v34 = vrot.slane %v1066_v18, 6  ;;  %v1068_v36 = vpop.f32.mrb[14].mxu1  ;;  %v1109_v37 = vpop.f32.mrb[18].mxu0  ;;  %v1119_v4 = vrot.slane %v1107_v20, 6 }
 0x4cb   : > { %v1124_v15 = vadd.f32 %v1116_v2, %v3042_v14  ;;  %v1069_v40 = vpop.f32.mrb[15].mxu1  ;;  %v1110_v42 = vpop.f32.mrb[19].mxu0  ;;  %v1126_v5 = vadd.f32 %v1118_v46, %v3046_v39 }
 0x4cc   : > { %v1125_v44 = vadd.f32 %v1117_v34, %v3044_v17  ;;  %v1127_v7 = vadd.f32 %v1119_v4, %v3048_v41 }
 0x4cd   : > { %v2097_v45 = vmul.f32 -1.442695, %v1124_v15  ;;  %v2099_v8 = vmul.f32 -1.442695, %v1126_v5 }
 0x4ce   : > { %v2098_v47 = vmul.f32 -1.442695, %v1125_v44 }
 0x4cf   : > { %2392 = vpow2.f32 %v2097_v45  ;;  %v1805_v45 = vsel %vm1804_vm5, %v3057_v43, %v3103_v12 }
 0x4d0   : > { %2394 = vpow2.f32 %v2098_v47 }
 0x4d1   : > { %2396 = vtanh.f32 %v1127_v7 }
 0x4d2   : > { %2398 = vpow2.f32 %v2099_v8 }
 0x4d9   : > { %v2393_v10 = vpop.eup %2392 }
 0x4da   : > { %v1137_v11 = vadd.f32 1.0, %v2393_v10  ;;  %v2395_v13 = vpop.eup %2394 }
 0x4db   : > { %v1138_v3 = vadd.f32 1.0, %v2395_v13  ;;  %v2397_v38 = vpop.eup %2396 }
 0x4dc   : > { %2400 = vrcp.f32 %v1137_v11  ;;  %v2399_v2 = vpop.eup %2398 }
 0x4dd   : > { %2402 = vrcp.f32 %v1138_v3  ;;  %v1139_v36 = vadd.f32 1.0, %v2399_v2 }
 0x4df   : > { %2404 = vrcp.f32 %v1139_v36 }
 0x4e6   : > { %v2401_v18 = vpop.eup %2400 }
 0x4e7   : > { %v1151_v34 = vmul.f32 %v2401_v18, %v2397_v38  ;;  %v2403_v20 = vpop.eup %2402 }
 0x4e8   : > { %v1150_v37 = vmul.f32 %v2403_v20, %v1148_v16 }
 0x4e9   : > { %v2405_v40 = vpop.eup %2404 }
 0x4ea   : > { %v3146_v15 = vadd.f32 %v1151_v34, %v1150_v37 }
 0x4ec   : > { %2406 = vtanh.f32 %v3146_v15 }
 0x4f6   : > { %v2407_v42 = vpop.eup %2406 }
 0x4f7   : > { %v1154_v44 = vmul.f32 %v2407_v42, %v2405_v40 }
 0x4f9   : > { %v1155_v47 = vpack.c.bf16 %v1154_v44, %v1154_v44  ;;  %v3151_v46 = vsel %vm1806_vm6, %v1805_v45, %v1154_v44 }
 0x4fb   : > { %v1157_v9 = vrot.slane %v1155_v47, 1 }
 0x4fd   : > { %1192 = vmatmul.mubr.bf16.vlgmr.msra.gmra.mrb[16].mxu1 %v1157_v9  ;;  %1233 = vmatmul.mubr.bf16.vlgmr.msra.gmra.mrb[20].mxu0 %v1157_v9 }
 0x4fe   : > { %1291 = vmatpush1.bf16.msra.mxu1 %v2902_v19  ;;  %1332 = vmatpush1.bf16.msra.mxu0 %v2971_v49 }
 0x4ff   : > { %1292 = vmatprep.subr.bf16.mxu1 %v2904_v21  ;;  %1333 = vmatprep.subr.bf16.mxu0 %v2974_v50 }
 0x500   : > { %1322 = vmatprep.mubr.bf16.mxu1 %v2686_v0  ;;  %1363 = vmatprep.mubr.bf16.mxu0 %v2686_v0 }
 0x502   : > { %1293 = vmatpush1.bf16.msra.mxu1 %v2907_v22  ;;  %1334 = vmatpush1.bf16.msra.mxu0 %v2978_v51 }
 0x503   : > { %1294 = vmatprep.subr.bf16.mxu1 %v2911_v23  ;;  %1335 = vmatprep.subr.bf16.mxu0 %v2982_v52 }
 0x506   : > { %1295 = vmatpush1.bf16.msra.mxu1 %v2914_v24  ;;  %1336 = vmatpush1.bf16.msra.mxu0 %v2985_v53 }
 0x507   : > { %1296 = vmatprep.subr.bf16.mxu1 %v2917_v25  ;;  %1337 = vmatprep.subr.bf16.mxu0 %v2988_v54 }
 0x50a   : > { %1297 = vmatpush1.bf16.msra.mxu1 %v2920_v26  ;;  %1338 = vmatpush1.bf16.msra.mxu0 %v2991_v55 }
 0x50b   : > { %1298 = vmatprep.subr.bf16.mxu1 %v2923_v27  ;;  %1339 = vmatprep.subr.bf16.mxu0 %v2994_v56 }
 0x50e   : > { %1299 = vmatpush1.bf16.msra.mxu1 %v2926_v28  ;;  %1340 = vmatpush1.bf16.msra.mxu0 %v2997_v57 }
 0x50f   : > { %1300 = vmatprep.subr.bf16.mxu1 %v2929_v29  ;;  %1341 = vmatprep.subr.bf16.mxu0 %v3000_v58 }
 0x512   : > { %1301 = vmatpush1.bf16.msra.mxu1 %v2932_v30  ;;  %1342 = vmatpush1.bf16.msra.mxu0 %v3003_v59 }
 0x513   : > { %1302 = vmatprep.subr.bf16.mxu1 %v2935_v31  ;;  %1343 = vmatprep.subr.bf16.mxu0 %v3006_v60 }
 0x516   : > { %1303 = vmatpush1.bf16.msra.mxu1 %v2938_v32  ;;  %1344 = vmatpush1.bf16.msra.mxu0 %v3009_v61 }
 0x517   : > { %1304 = vmatprep.subr.bf16.mxu1 %v2942_v33  ;;  %1345 = vmatprep.subr.bf16.mxu0 %v3012_v62 }
 0x51a   : > { %1305 = vmatpush1.bf16.msra.mxu1 %v2944_v35  ;;  %1346 = vmatpush1.bf16.msra.mxu0 %v3015_v63 }
 0x51b   : > { %1419 = vmatprep.subr.bf16.mxu1 %v2897_v6  ;;  %1460 = vmatprep.subr.bf16.mxu0 %v2969_v48 }
 0x5d0   : > { %v1193_v43 = vpop.f32.mrb[16].mxu1  ;;  %v1234_v12 = vpop.f32.mrb[20].mxu0 }
 0x5d1   : > { %v1245_v4 = vrot.slane %v1193_v43, 5  ;;  %v1195_v5 = vpop.f32.mrb[17].mxu1  ;;  %v1236_v7 = vpop.f32.mrb[21].mxu0  ;;  %v1247_v6 = vrot.slane %v1234_v12, 5  ;;  %v1277_v12 = vrot.slane %v3146_v15, 7 }
 0x5d2   : > { %v1246_v8 = vrot.slane %v1195_v5, 5  ;;  %v1197_v10 = vpop.f32.mrb[18].mxu1  ;;  %v1238_v11 = vpop.f32.mrb[22].mxu0  ;;  %v1248_v34 = vrot.slane %v1236_v7, 5 }
 0x5d3   : > { %v1253_v13 = vadd.f32 %v1245_v4, %v3042_v14  ;;  %v1198_v3 = vpop.f32.mrb[19].mxu1  ;;  %v1239_v38 = vpop.f32.mrb[23].mxu0  ;;  %v1255_v20 = vadd.f32 %v1247_v6, %v3046_v39 }
 0x5d4   : > { %v1254_v2 = vadd.f32 %v1246_v8, %v3044_v17  ;;  %v1256_v36 = vadd.f32 %v1248_v34, %v3048_v41 }
 0x5d5   : > { %v2100_v18 = vmul.f32 -1.442695, %v1253_v13  ;;  %v2102_v37 = vmul.f32 -1.442695, %v1255_v20 }
 0x5d6   : > { %v2101_v16 = vmul.f32 -1.442695, %v1254_v2 }
 0x5d7   : > { %2408 = vpow2.f32 %v2100_v18 }
 0x5d8   : > { %2410 = vpow2.f32 %v2101_v16 }
 0x5d9   : > { %2412 = vtanh.f32 %v1256_v36 }
 0x5da   : > { %2414 = vpow2.f32 %v2102_v37 }
 0x5e1   : > { %v2409_v40 = vpop.eup %2408 }
 0x5e2   : > { %v1266_v42 = vadd.f32 1.0, %v2409_v40  ;;  %v2411_v44 = vpop.eup %2410 }
 0x5e3   : > { %v1267_v45 = vadd.f32 1.0, %v2411_v44  ;;  %v2413_v47 = vpop.eup %2412 }
 0x5e4   : > { %2416 = vrcp.f32 %v1266_v42  ;;  %v2415_v9 = vpop.eup %2414 }
 0x5e5   : > { %2418 = vrcp.f32 %v1267_v45  ;;  %v1268_v7 = vadd.f32 1.0, %v2415_v9 }
 0x5e7   : > { %2420 = vrcp.f32 %v1268_v7 }
 0x5ee   : > { %v2417_v43 = vpop.eup %2416 }
 0x5ef   : > { %v1280_v4 = vmul.f32 %v2417_v43, %v2413_v47  ;;  %v2419_v5 = vpop.eup %2418 }
 0x5f0   : > { %v1279_v8 = vmul.f32 %v2419_v5, %v1277_v12 }
 0x5f1   : > { %v2421_v11 = vpop.eup %2420 }
 0x5f2   : > { %v3192_v10 = vadd.f32 %v1280_v4, %v1279_v8 }
 0x5f4   : > { %2422 = vtanh.f32 %v3192_v10  ;;  %v1408_v9 = vrot.slane %v3192_v10, 7  ;;  %v3245_v10 = vld [vmem:[#allocation5] ss:$16 sps:$4 sm:$0xff]  }
 0x5fe   : > { %v2423_v13 = vpop.eup %2422 }
 0x5ff   : > { %v1283_v3 = vmul.f32 %v2423_v13, %v2421_v11 }
 0x601   : > { %v1284_v38 = vpack.c.bf16 %v1283_v3, %v1283_v3  ;;  %v3196_v2 = vsel %vm1808_vm7, %v3151_v46, %v1283_v3 }
 0x603   : > { %v1286_v18 = vshrl.u32 %v1284_v38, 16 }
 0x605   : > { %v1288_v16 = vrot.slane %v1286_v18, 1 }
 0x607   : > { %1323 = vmatmul.mubr.bf16.vlgmr.msra.gmra.mrb[20].mxu1 %v1288_v16  ;;  %1364 = vmatmul.mubr.bf16.vlgmr.msra.gmra.mrb[24].mxu0 %v1288_v16  ;;  %v3249_v16 = vld [vmem:[#allocation5 + $0x24] ss:$16 sps:$4 sm:$0xff]  }
 0x608   : > { %1420 = vmatpush1.bf16.msra.mxu1 %v2902_v19  ;;  %1461 = vmatpush1.bf16.msra.mxu0 %v2971_v49  ;;  %v3230_v19 = vld [vmem:[#allocation5 + $0x4] ss:$16 sps:$4 sm:$0xff]  }
 0x609   : > { %1421 = vmatprep.subr.bf16.mxu1 %v2904_v21  ;;  %1462 = vmatprep.subr.bf16.mxu0 %v2974_v50 }
 0x60a   : > { %1451 = vmatprep.mubr.bf16.mxu1 %v2686_v0  ;;  %1492 = vmatprep.mubr.bf16.mxu0 %v2686_v0 }
 0x60c   : > { %1422 = vmatpush1.bf16.msra.mxu1 %v2907_v22  ;;  %1463 = vmatpush1.bf16.msra.mxu0 %v2978_v51 }
 0x60d   : > { %1423 = vmatprep.subr.bf16.mxu1 %v2911_v23  ;;  %1464 = vmatprep.subr.bf16.mxu0 %v2982_v52 }
 0x610   : > { %1424 = vmatpush1.bf16.msra.mxu1 %v2914_v24  ;;  %1465 = vmatpush1.bf16.msra.mxu0 %v2985_v53 }
 0x611   : > { %1425 = vmatprep.subr.bf16.mxu1 %v2917_v25  ;;  %1466 = vmatprep.subr.bf16.mxu0 %v2988_v54 }
 0x614   : > { %1426 = vmatpush1.bf16.msra.mxu1 %v2920_v26  ;;  %1467 = vmatpush1.bf16.msra.mxu0 %v2991_v55 }
 0x615   : > { %1427 = vmatprep.subr.bf16.mxu1 %v2923_v27  ;;  %1468 = vmatprep.subr.bf16.mxu0 %v2994_v56 }
 0x618   : > { %1428 = vmatpush1.bf16.msra.mxu1 %v2926_v28  ;;  %1469 = vmatpush1.bf16.msra.mxu0 %v2997_v57 }
 0x619   : > { %1429 = vmatprep.subr.bf16.mxu1 %v2929_v29  ;;  %1470 = vmatprep.subr.bf16.mxu0 %v3000_v58 }
 0x61c   : > { %1430 = vmatpush1.bf16.msra.mxu1 %v2932_v30  ;;  %1471 = vmatpush1.bf16.msra.mxu0 %v3003_v59 }
 0x61d   : > { %1431 = vmatprep.subr.bf16.mxu1 %v2935_v31  ;;  %1472 = vmatprep.subr.bf16.mxu0 %v3006_v60 }
 0x620   : > { %1432 = vmatpush1.bf16.msra.mxu1 %v2938_v32  ;;  %1473 = vmatpush1.bf16.msra.mxu0 %v3009_v61 }
 0x621   : > { %1433 = vmatprep.subr.bf16.mxu1 %v2942_v33  ;;  %1474 = vmatprep.subr.bf16.mxu0 %v3012_v62 }
 0x624   : > { %1434 = vmatpush1.bf16.msra.mxu1 %v2944_v35  ;;  %1475 = vmatpush1.bf16.msra.mxu0 %v3015_v63 }
 0x625   : > { %1550 = vmatprep.subr.bf16.mxu1 %v3230_v19  ;;  %1591 = vmatprep.subr.bf16.mxu0 %v2969_v48 }
 0x6da   : > { %v1324_v21 = vpop.f32.mrb[20].mxu1  ;;  %v1365_v22 = vpop.f32.mrb[24].mxu0 }
 0x6db   : > { %v1376_v23 = vrot.slane %v1324_v21, 4  ;;  %v1326_v24 = vpop.f32.mrb[21].mxu1  ;;  %v1367_v25 = vpop.f32.mrb[25].mxu0  ;;  %v1378_v15 = vrot.slane %v1365_v22, 4  ;;  %v3259_v21 = vld [vmem:[#allocation5 + $0x44] ss:$16 sps:$4 sm:$0xff]  }
 0x6dc   : > { %v1377_v26 = vrot.slane %v1326_v24, 4  ;;  %v1328_v27 = vpop.f32.mrb[22].mxu1  ;;  %v1369_v28 = vpop.f32.mrb[26].mxu0  ;;  %v1379_v46 = vrot.slane %v1367_v25, 4  ;;  %v3271_v22 = vld [vmem:[#allocation5 + $0x60] ss:$16 sps:$4 sm:$0xff]  }
 0x6dd   : > { %v1384_v29 = vadd.f32 %v1376_v23, %v3042_v14  ;;  %v1329_v30 = vpop.f32.mrb[23].mxu1  ;;  %v1370_v31 = vpop.f32.mrb[27].mxu0  ;;  %v1386_v6 = vadd.f32 %v1378_v15, %v3046_v39 }
 0x6de   : > { %v1385_v32 = vadd.f32 %v1377_v26, %v3044_v17  ;;  %v1387_v34 = vadd.f32 %v1379_v46, %v3048_v41 }
 0x6df   : > { %v2103_v33 = vmul.f32 -1.442695, %v1384_v29  ;;  %v2105_v20 = vmul.f32 -1.442695, %v1386_v6 }
 0x6e0   : > { %v2104_v35 = vmul.f32 -1.442695, %v1385_v32 }
 0x6e1   : > { %2424 = vpow2.f32 %v2103_v33 }
 0x6e2   : > { %2426 = vpow2.f32 %v2104_v35 }
 0x6e3   : > { %2428 = vtanh.f32 %v1387_v34 }
 0x6e4   : > { %2430 = vpow2.f32 %v2105_v20 }
 0x6eb   : > { %v2425_v36 = vpop.eup %2424 }
 0x6ec   : > { %v1397_v37 = vadd.f32 1.0, %v2425_v36  ;;  %v2427_v40 = vpop.eup %2426 }
 0x6ed   : > { %v1398_v42 = vadd.f32 1.0, %v2427_v40  ;;  %v2429_v44 = vpop.eup %2428 }
 0x6ee   : > { %2432 = vrcp.f32 %v1397_v37  ;;  %v2431_v45 = vpop.eup %2430 }
 0x6ef   : > { %2434 = vrcp.f32 %v1398_v42  ;;  %v1399_v4 = vadd.f32 1.0, %v2431_v45 }
 0x6f1   : > { %2436 = vrcp.f32 %v1399_v4 }
 0x6f8   : > { %v2433_v47 = vpop.eup %2432 }
 0x6f9   : > { %v1411_v43 = vmul.f32 %v2433_v47, %v2429_v44  ;;  %v2435_v12 = vpop.eup %2434 }
 0x6fa   : > { %v1410_v5 = vmul.f32 %v2435_v12, %v1408_v9 }
 0x6fb   : > { %v2437_v8 = vpop.eup %2436 }
 0x6fc   : > { %v3239_v7 = vadd.f32 %v1411_v43, %v1410_v5 }
 0x6fe   : > { %2438 = vtanh.f32 %v3239_v7  ;;  %v1537_v40 = vrot.slane %v3239_v7, 7  ;;  %v2508_v7 = vld [vmem:[#allocation5 + $0x8] ss:$16 sps:$4 sm:$0xff]  }
 0x708   : > { %v2439_v11 = vpop.eup %2438 }
 0x709   : > { %v1414_v13 = vmul.f32 %v2439_v11, %v2437_v8 }
 0x70b   : > { %v1415_v3 = vpack.c.bf16 %v1414_v13, %v1414_v13  ;;  %v3243_v38 = vsel %vm1810_vm8, %v3196_v2, %v1414_v13  ;;  %v3255_v2 = vld [vmem:[#allocation5 + $0x20] ss:$16 sps:$4 sm:$0xff]  }
 0x70d   : > { %v1417_v18 = vrot.slane %v1415_v3, 2  ;;  %v2509_v3 = vld [vmem:[#allocation5 + $0x2c] ss:$16 sps:$4 sm:$0xff]  }
 0x70f   : > { %1452 = vmatmul.mubr.bf16.vlgmr.msra.gmra.mrb[24].mxu1 %v1417_v18  ;;  %1493 = vmatmul.mubr.bf16.vlgmr.msra.gmra.mrb[28].mxu0 %v1417_v18  ;;  %v2511_v18 = vld [vmem:[#allocation5 + $0x4c] ss:$16 sps:$4 sm:$0xff]  }
 0x710   : > { %1551 = vmatpush1.bf16.msra.mxu1 %v3245_v10  ;;  %1592 = vmatpush1.bf16.msra.mxu0 %v2971_v49  ;;  %v3263_v49 = vld [vmem:[#allocation5 + $0x40] ss:$16 sps:$4 sm:$0xff]  }
 0x711   : > { %1552 = vmatprep.subr.bf16.mxu1 %v3249_v16  ;;  %1593 = vmatprep.subr.bf16.mxu0 %v2974_v50  ;;  %v3267_v50 = vld [vmem:[#allocation5 + $0x64] ss:$16 sps:$4 sm:$0xff]  }
 0x712   : > { %1582 = vmatprep.mubr.bf16.mxu1 %v2686_v0  ;;  %1623 = vmatprep.mubr.bf16.mxu0 %v2686_v0 }
 0x714   : > { %1553 = vmatpush1.bf16.msra.mxu1 %v3255_v2  ;;  %1594 = vmatpush1.bf16.msra.mxu0 %v2978_v51  ;;  %v3275_v51 = vld [vmem:[#allocation5 + $0x84] ss:$16 sps:$4 sm:$0xff]  }
 0x715   : > { %1554 = vmatprep.subr.bf16.mxu1 %v3259_v21  ;;  %1595 = vmatprep.subr.bf16.mxu0 %v2982_v52  ;;  %v3279_v52 = vld [vmem:[#allocation5 + $0x80] ss:$16 sps:$4 sm:$0xff]  }
 0x718   : > { %1555 = vmatpush1.bf16.msra.mxu1 %v3263_v49  ;;  %1596 = vmatpush1.bf16.msra.mxu0 %v2985_v53  ;;  %v3283_v53 = vld [vmem:[#allocation5 + $0xa4] ss:$16 sps:$4 sm:$0xff]  }
 0x719   : > { %1556 = vmatprep.subr.bf16.mxu1 %v3267_v50  ;;  %1597 = vmatprep.subr.bf16.mxu0 %v2988_v54  ;;  %v3287_v54 = vld [vmem:[#allocation5 + $0xa0] ss:$16 sps:$4 sm:$0xff]  }
 0x71c   : > { %1557 = vmatpush1.bf16.msra.mxu1 %v3271_v22  ;;  %1598 = vmatpush1.bf16.msra.mxu0 %v2991_v55  ;;  %v3291_v55 = vld [vmem:[#allocation5 + $0xc4] ss:$16 sps:$4 sm:$0xff]  }
 0x71d   : > { %1558 = vmatprep.subr.bf16.mxu1 %v3275_v51  ;;  %1599 = vmatprep.subr.bf16.mxu0 %v2994_v56  ;;  %v3295_v56 = vld [vmem:[#allocation5 + $0xc0] ss:$16 sps:$4 sm:$0xff]  }
 0x720   : > { %1559 = vmatpush1.bf16.msra.mxu1 %v3279_v52  ;;  %1600 = vmatpush1.bf16.msra.mxu0 %v2997_v57  ;;  %v3299_v57 = vld [vmem:[#allocation5 + $0xe4] ss:$16 sps:$4 sm:$0xff]  }
 0x721   : > { %1560 = vmatprep.subr.bf16.mxu1 %v3283_v53  ;;  %1601 = vmatprep.subr.bf16.mxu0 %v3000_v58  ;;  %v3303_v58 = vld [vmem:[#allocation5 + $0xe0] ss:$16 sps:$4 sm:$0xff]  }
 0x724   : > { %1561 = vmatpush1.bf16.msra.mxu1 %v3287_v54  ;;  %1602 = vmatpush1.bf16.msra.mxu0 %v3003_v59 }
 0x725   : > { %1562 = vmatprep.subr.bf16.mxu1 %v3291_v55  ;;  %1603 = vmatprep.subr.bf16.mxu0 %v3006_v60 }
 0x728   : > { %1563 = vmatpush1.bf16.msra.mxu1 %v3295_v56  ;;  %1604 = vmatpush1.bf16.msra.mxu0 %v3009_v61 }
 0x729   : > { %1564 = vmatprep.subr.bf16.mxu1 %v3299_v57  ;;  %1605 = vmatprep.subr.bf16.mxu0 %v3012_v62 }
 0x72c   : > { %1565 = vmatpush1.bf16.msra.mxu1 %v3303_v58  ;;  %1606 = vmatpush1.bf16.msra.mxu0 %v3015_v63 }
 0x72d   : > { %1679 = vmatprep.subr.bf16.mxu1 %v3230_v19  ;;  %1720 = vmatprep.subr.bf16.mxu0 %v2969_v48 }
 0x7e2   : > { %v1453_v59 = vpop.f32.mrb[24].mxu1  ;;  %v1494_v60 = vpop.f32.mrb[28].mxu0 }
 0x7e3   : > { %v1505_v23 = vrot.slane %v1453_v59, 3  ;;  %v1455_v61 = vpop.f32.mrb[25].mxu1  ;;  %v1496_v24 = vpop.f32.mrb[29].mxu0  ;;  %v1507_v19 = vrot.slane %v1494_v60, 3  ;;  %v2514_v59 = vld [vmem:[#allocation5 + $0x68] ss:$16 sps:$4 sm:$0xff]  }
 0x7e4   : > { %v1506_v25 = vrot.slane %v1455_v61, 3  ;;  %v1457_v26 = vpop.f32.mrb[26].mxu1  ;;  %v1498_v27 = vpop.f32.mrb[30].mxu0  ;;  %v1508_v48 = vrot.slane %v1496_v24, 3 }
 0x7e5   : > { %v1513_v62 = vadd.f32 %v1505_v23, %v3042_v14  ;;  %v1458_v28 = vpop.f32.mrb[27].mxu1  ;;  %v1499_v29 = vpop.f32.mrb[31].mxu0  ;;  %v1515_v32 = vadd.f32 %v1507_v19, %v3046_v39 }
 0x7e6   : > { %v1514_v30 = vadd.f32 %v1506_v25, %v3044_v17  ;;  %v1516_v33 = vadd.f32 %v1508_v48, %v3048_v41 }
 0x7e7   : > { %v2106_v31 = vmul.f32 -1.442695, %v1513_v62  ;;  %v2108_v35 = vmul.f32 -1.442695, %v1515_v32 }
 0x7e8   : > { %v2107_v63 = vmul.f32 -1.442695, %v1514_v30 }
 0x7e9   : > { %2440 = vpow2.f32 %v2106_v31 }
 0x7ea   : > { %2442 = vpow2.f32 %v2107_v63 }
 0x7eb   : > { %2444 = vtanh.f32 %v1516_v33 }
 0x7ec   : > { %2446 = vpow2.f32 %v2108_v35 }
 0x7f3   : > { %v2441_v15 = vpop.eup %2440 }
 0x7f4   : > { %v1526_v46 = vadd.f32 1.0, %v2441_v15  ;;  %v2443_v6 = vpop.eup %2442 }
 0x7f5   : > { %v1527_v34 = vadd.f32 1.0, %v2443_v6  ;;  %v2445_v20 = vpop.eup %2444 }
 0x7f6   : > { %2448 = vrcp.f32 %v1526_v46  ;;  %v2447_v36 = vpop.eup %2446 }
 0x7f7   : > { %2450 = vrcp.f32 %v1527_v34  ;;  %v1528_v45 = vadd.f32 1.0, %v2447_v36 }
 0x7f9   : > { %2452 = vrcp.f32 %v1528_v45 }
 0x800   : > { %v2449_v37 = vpop.eup %2448 }
 0x801   : > { %v1540_v42 = vmul.f32 %v2449_v37, %v2445_v20  ;;  %v2451_v44 = vpop.eup %2450 }
 0x802   : > { %v1539_v47 = vmul.f32 %v2451_v44, %v1537_v40 }
 0x803   : > { %v2453_v43 = vpop.eup %2452 }
 0x804   : > { %v3314_v9 = vadd.f32 %v1540_v42, %v1539_v47 }
 0x806   : > { %2454 = vtanh.f32 %v3314_v9  ;;  %v1668_v6 = vrot.slane %v3314_v9, 7  ;;  %v1817_v9 = vld [vmem:[#allocation7] sm:$0xff] }
 0x810   : > { %v2455_v12 = vpop.eup %2454 }
 0x811   : > { %v1543_v4 = vmul.f32 %v2455_v12, %v2453_v43 }
 0x813   : > { %v1544_v5 = vpack.c.bf16 %v1543_v4, %v1543_v4  ;;  %v3318_v8 = vsel %vm1812_vm9, %v3243_v38, %v1543_v4  ;;  %v2510_v38 = vld [vmem:[#allocation5 + $0x28] ss:$16 sps:$4 sm:$0xff]  }
 0x814   : > { %v1818_v4 = vld [vmem:[#allocation7 + $0x8] sm:$0xff] }
 0x815   : > { %v1546_v11 = vshrl.u32 %v1544_v5, 16  ;;  %v2184_v5 = vpack.c.bf16 %v1818_v4, %v1817_v9 }
 0x817   : > { %v1548_v13 = vrot.slane %v1546_v11, 2  ;;  %v2689_v11 = vmov 0.0|0.0  }
 0x819   : > { %1583 = vmatmul.mubr.bf16.vlgmr.msra.gmra.mrb[28].mxu1 %v1548_v13  ;;  %1624 = vmatmul.mubr.bf16.vlgmr.msra.gmra.mrb[32].mxu0 %v1548_v13  ;;  %v1819_v13 = vld [vmem:[#allocation7 + $0x10] sm:$0xff] }
 0x81a   : > { %1680 = vmatpush1.bf16.msra.mxu1 %v3245_v10  ;;  %1721 = vmatpush1.bf16.msra.mxu0 %v2508_v7  ;;  %v2512_v10 = vld [vmem:[#allocation5 + $0x48] ss:$16 sps:$4 sm:$0xff]  }
 0x81b   : > { %1681 = vmatprep.subr.bf16.mxu1 %v3249_v16  ;;  %1722 = vmatprep.subr.bf16.mxu0 %v2509_v3  ;;  %v2513_v16 = vld [vmem:[#allocation5 + $0x6c] ss:$16 sps:$4 sm:$0xff]  }
 0x81c   : > { %1711 = vmatprep.mubr.bf16.mxu1 %v2686_v0  ;;  %1752 = vmatprep.mubr.bf16.mxu0 %v2686_v0  ;;  %v2515_v0 = vld [vmem:[#allocation5 + $0x8c] ss:$16 sps:$4 sm:$0xff]  }
 0x81d   : > { %v1820_v7 = vld [vmem:[#allocation7 + $0x18] sm:$0xff] }
 0x81e   : > { %1682 = vmatpush1.bf16.msra.mxu1 %v3255_v2  ;;  %1723 = vmatpush1.bf16.msra.mxu0 %v2510_v38  ;;  %v2516_v2 = vld [vmem:[#allocation5 + $0x88] ss:$16 sps:$4 sm:$0xff]   ;;  %v2187_v3 = vpack.c.bf16 %v1820_v7, %v1819_v13 }
 0x81f   : > { %1683 = vmatprep.subr.bf16.mxu1 %v3259_v21  ;;  %1724 = vmatprep.subr.bf16.mxu0 %v2511_v18  ;;  %v2517_v21 = vld [vmem:[#allocation5 + $0xac] ss:$16 sps:$4 sm:$0xff]  }
 0x820   : > { %v1822_v38 = vld [vmem:[#allocation7 + $0x28] sm:$0xff] }
 0x822   : > { %1684 = vmatpush1.bf16.msra.mxu1 %v3263_v49  ;;  %1725 = vmatpush1.bf16.msra.mxu0 %v2512_v10  ;;  %v2518_v49 = vld [vmem:[#allocation5 + $0xa8] ss:$16 sps:$4 sm:$0xff]   ;;  %v1823_v10 = vld [vmem:[#allocation7 + $0x30] sm:$0xff] }
 0x823   : > { %1685 = vmatprep.subr.bf16.mxu1 %v3267_v50  ;;  %1726 = vmatprep.subr.bf16.mxu0 %v2513_v16  ;;  %v2519_v50 = vld [vmem:[#allocation5 + $0xcc] ss:$16 sps:$4 sm:$0xff]  }
 0x824   : > { %v1824_v16 = vld [vmem:[#allocation7 + $0x38] sm:$0xff] }
 0x826   : > { %1686 = vmatpush1.bf16.msra.mxu1 %v3271_v22  ;;  %1727 = vmatpush1.bf16.msra.mxu0 %v2514_v59  ;;  %v2520_v22 = vld [vmem:[#allocation5 + $0xc8] ss:$16 sps:$4 sm:$0xff]   ;;  %v1825_v59 = vld [vmem:[#allocation7 + $0x40] sm:$0xff] }
 0x827   : > { %1687 = vmatprep.subr.bf16.mxu1 %v3275_v51  ;;  %1728 = vmatprep.subr.bf16.mxu0 %v2515_v0  ;;  %v2521_v51 = vld [vmem:[#allocation5 + $0xec] ss:$16 sps:$4 sm:$0xff]  }
 0x828   : > { %v1826_v0 = vld [vmem:[#allocation7 + $0x48] sm:$0xff] }
 0x82a   : > { %1688 = vmatpush1.bf16.msra.mxu1 %v3279_v52  ;;  %1729 = vmatpush1.bf16.msra.mxu0 %v2516_v2  ;;  %v2522_v52 = vld [vmem:[#allocation5 + $0xe8] ss:$16 sps:$4 sm:$0xff]   ;;  %v2196_v2 = vpack.c.bf16 %v1826_v0, %v1825_v59 }
 0x82b   : > { %1689 = vmatprep.subr.bf16.mxu1 %v3283_v53  ;;  %1730 = vmatprep.subr.bf16.mxu0 %v2517_v21  ;;  %v1827_v21 = vld [vmem:[#allocation7 + $0x50] sm:$0xff] }
 0x82e   : > { %1690 = vmatpush1.bf16.msra.mxu1 %v3287_v54  ;;  %1731 = vmatpush1.bf16.msra.mxu0 %v2518_v49  ;;  %v1828_v49 = vld [vmem:[#allocation7 + $0x58] sm:$0xff] }
 0x82f   : > { %1691 = vmatprep.subr.bf16.mxu1 %v3291_v55  ;;  %1732 = vmatprep.subr.bf16.mxu0 %v2519_v50  ;;  %v1829_v50 = vld [vmem:[#allocation7 + $0x60] sm:$0xff] }
 0x832   : > { %1692 = vmatpush1.bf16.msra.mxu1 %v3295_v56  ;;  %1733 = vmatpush1.bf16.msra.mxu0 %v2520_v22  ;;  %v2199_v22 = vpack.c.bf16 %v1828_v49, %v1827_v21 }
 0x833   : > { %1693 = vmatprep.subr.bf16.mxu1 %v3299_v57  ;;  %1734 = vmatprep.subr.bf16.mxu0 %v2521_v51  ;;  %v1830_v51 = vld [vmem:[#allocation7 + $0x68] sm:$0xff] }
 0x836   : > { %1694 = vmatpush1.bf16.msra.mxu1 %v3303_v58  ;;  %1735 = vmatpush1.bf16.msra.mxu0 %v2522_v52  ;;  %v2202_v52 = vpack.c.bf16 %v1830_v51, %v1829_v50 }
 0x837   : > { %2183 = vmatprep.subr.bf16.mxu1 %v2689_v11 }
 0x8ec   : > { %v1584_v53 = vpop.f32.mrb[28].mxu1  ;;  %v1625_v54 = vpop.f32.mrb[32].mxu0 }
 0x8ed   : > { %v1636_v60 = vrot.slane %v1584_v53, 2  ;;  %v1586_v23 = vpop.f32.mrb[29].mxu1  ;;  %v1627_v61 = vpop.f32.mrb[33].mxu0  ;;  %v1638_v58 = vrot.slane %v1625_v54, 2  ;;  %v1831_v53 = vld [vmem:[#allocation7 + $0x70] sm:$0xff]  ;;  %v1832_v54 = vld [vmem:[#allocation7 + $0x78] sm:$0xff] }
 0x8ee   : > { %v1637_v55 = vrot.slane %v1586_v23, 2  ;;  %v1588_v24 = vpop.f32.mrb[30].mxu1  ;;  %v1629_v25 = vpop.f32.mrb[34].mxu0  ;;  %v1639_v29 = vrot.slane %v1627_v61, 2 }
 0x8ef   : > { %v1644_v56 = vadd.f32 %v1636_v60, %v3042_v14  ;;  %v1589_v26 = vpop.f32.mrb[31].mxu1  ;;  %v1630_v27 = vpop.f32.mrb[35].mxu0  ;;  %v1646_v30 = vadd.f32 %v1638_v58, %v3046_v39  ;;  %v2205_v60 = vpack.c.bf16 %v1832_v54, %v1831_v53 }
 0x8f0   : > { %v1645_v57 = vadd.f32 %v1637_v55, %v3044_v17  ;;  %v1647_v31 = vadd.f32 %v1639_v29, %v3048_v41 }
 0x8f1   : > { %v2109_v62 = vmul.f32 -1.442695, %v1644_v56  ;;  %v2111_v63 = vmul.f32 -1.442695, %v1646_v30 }
 0x8f2   : > { %v2110_v28 = vmul.f32 -1.442695, %v1645_v57 }
 0x8f3   : > { %2456 = vpow2.f32 %v2109_v62 }
 0x8f4   : > { %2458 = vpow2.f32 %v2110_v28 }
 0x8f5   : > { %2460 = vtanh.f32 %v1647_v31 }
 0x8f6   : > { %2462 = vpow2.f32 %v2111_v63 }
 0x8fd   : > { %v2457_v19 = vpop.eup %2456 }
 0x8fe   : > { %v1657_v48 = vadd.f32 1.0, %v2457_v19  ;;  %v2459_v32 = vpop.eup %2458 }
 0x8ff   : > { %v1658_v33 = vadd.f32 1.0, %v2459_v32  ;;  %v2461_v35 = vpop.eup %2460 }
 0x900   : > { %2464 = vrcp.f32 %v1657_v48  ;;  %v2463_v15 = vpop.eup %2462 }
 0x901   : > { %2466 = vrcp.f32 %v1658_v33  ;;  %v1659_v36 = vadd.f32 1.0, %v2463_v15 }
 0x903   : > { %2468 = vrcp.f32 %v1659_v36 }
 0x90a   : > { %v2465_v46 = vpop.eup %2464 }
 0x90b   : > { %v1671_v34 = vmul.f32 %v2465_v46, %v2461_v35  ;;  %v2467_v20 = vpop.eup %2466 }
 0x90c   : > { %v1670_v37 = vmul.f32 %v2467_v20, %v1668_v6 }
 0x90d   : > { %v2469_v42 = vpop.eup %2468 }
 0x90e   : > { %v3342_v40 = vadd.f32 %v1671_v34, %v1670_v37 }
 0x910   : > { %2470 = vtanh.f32 %v3342_v40  ;;  %v1797_v34 = vrot.slane %v3342_v40, 7 }
 0x91a   : > { %v2471_v44 = vpop.eup %2470 }
 0x91b   : > { %v1674_v45 = vmul.f32 %v2471_v44, %v2469_v42 }
 0x91d   : > { %v1675_v47 = vpack.c.bf16 %v1674_v45, %v1674_v45  ;;  %v3346_v43 = vsel %vm1814_vm10, %v3318_v8, %v1674_v45  ;;  %v1821_v8 = vld [vmem:[#allocation7 + $0x20] sm:$0xff] }
 0x91e   : > { %v2190_v18 = vpack.c.bf16 %v1822_v38, %v1821_v8 }
 0x91f   : > { %v1677_v12 = vrot.slane %v1675_v47, 3 }
 0x921   : > { %1712 = vmatmul.mubr.bf16.vlgmr.msra.gmra.mrb[32].mxu1 %v1677_v12  ;;  %1753 = vmatmul.mubr.bf16.vlgmr.msra.gmra.mrb[36].mxu0 %v1677_v12  ;;  %v2115_v12 = vld [vmem:[%s3413_s6] ss:$0 sm:$0xff] }
 0x922   : > { %2180 = vmatprep.mubr.msk.f32.mxu1 %vm2688_vm1, %v2687_v1  ;;  %2185 = vmatpush3.bf16.msra.mxu1 %v2184_v5  ;;  %v2193_v1 = vpack.c.bf16 %v1824_v16, %v1823_v10 }
 0x923   : > { %2186 = vmatprep.subr.bf16.mxu1 %v2689_v11 }
 0x926   : > { %2188 = vmatpush3.bf16.msra.mxu1 %v2187_v3 }
 0x927   : > { %2189 = vmatprep.subr.bf16.mxu1 %v2689_v11 }
 0x92a   : > { %2191 = vmatpush3.bf16.msra.mxu1 %v2190_v18 }
 0x92b   : > { %2192 = vmatprep.subr.bf16.mxu1 %v2689_v11 }
 0x92e   : > { %2194 = vmatpush3.bf16.msra.mxu1 %v2193_v1 }
 0x92f   : > { %2195 = vmatprep.subr.bf16.mxu1 %v2689_v11 }
 0x932   : > { %2197 = vmatpush3.bf16.msra.mxu1 %v2196_v2 }
 0x933   : > { %2198 = vmatprep.subr.bf16.mxu1 %v2689_v11 }
 0x936   : > { %2200 = vmatpush3.bf16.msra.mxu1 %v2199_v22 }
 0x937   : > { %2201 = vmatprep.subr.bf16.mxu1 %v2689_v11 }
 0x93a   : > { %2203 = vmatpush3.bf16.msra.mxu1 %v2202_v52 }
 0x93b   : > { %2204 = vmatprep.subr.bf16.mxu1 %v2689_v11 }
 0x93e   : > { %2206 = vmatpush3.bf16.msra.mxu1 %v2205_v60 }
 0x9f4   : > { %v1713_v23 = vpop.f32.mrb[32].mxu1  ;;  %v1754_v61 = vpop.f32.mrb[36].mxu0 }
 0x9f5   : > { %v1765_v55 = vrot.slane %v1713_v23, 1  ;;  %v1715_v24 = vpop.f32.mrb[33].mxu1  ;;  %v1756_v25 = vpop.f32.mrb[37].mxu0  ;;  %v1767_v31 = vrot.slane %v1754_v61, 1 }
 0x9f6   : > { %v1766_v56 = vrot.slane %v1715_v24, 1  ;;  %v1717_v26 = vpop.f32.mrb[34].mxu1  ;;  %v1758_v27 = vpop.f32.mrb[38].mxu0  ;;  %v1768_v63 = vrot.slane %v1756_v25, 1 }
 0x9f7   : > { %v1773_v57 = vadd.f32 %v1765_v55, %v3042_v14  ;;  %v1718_v62 = vpop.f32.mrb[35].mxu1  ;;  %v1759_v28 = vpop.f32.mrb[39].mxu0  ;;  %v1775_v19 = vadd.f32 %v1767_v31, %v3046_v39 }
 0x9f8   : > { %v1774_v58 = vadd.f32 %v1766_v56, %v3044_v17  ;;  %v1776_v48 = vadd.f32 %v1768_v63, %v3048_v41 }
 0x9f9   : > { %v2112_v29 = vmul.f32 -1.442695, %v1773_v57  ;;  %v2114_v32 = vmul.f32 -1.442695, %v1775_v19 }
 0x9fa   : > { %v2113_v30 = vmul.f32 -1.442695, %v1774_v58 }
 0x9fb   : > { %2472 = vpow2.f32 %v2112_v29 }
 0x9fc   : > { %2474 = vpow2.f32 %v2113_v30 }
 0x9fd   : > { %2476 = vtanh.f32 %v1776_v48 }
 0x9fe   : > { %2478 = vpow2.f32 %v2114_v32 }
 0xa05   : > { %v2473_v33 = vpop.eup %2472 }
 0xa06   : > { %v1786_v35 = vadd.f32 1.0, %v2473_v33  ;;  %v2475_v15 = vpop.eup %2474 }
 0xa07   : > { %v1787_v14 = vadd.f32 1.0, %v2475_v15  ;;  %v2477_v17 = vpop.eup %2476 }
 0xa08   : > { %2480 = vrcp.f32 %v1786_v35  ;;  %v2479_v46 = vpop.eup %2478 }
 0xa09   : > { %2482 = vrcp.f32 %v1787_v14  ;;  %v1788_v37 = vadd.f32 1.0, %v2479_v46 }
 0xa0b   : > { %2484 = vrcp.f32 %v1788_v37 }
 0xa12   : > { %v2481_v6 = vpop.eup %2480 }
 0xa13   : > { %v1800_v20 = vmul.f32 %v2481_v6, %v2477_v17  ;;  %v2483_v36 = vpop.eup %2482 }
 0xa14   : > { %v1799_v39 = vmul.f32 %v2483_v36, %v1797_v34 }
 0xa15   : > { %v2485_v41 = vpop.eup %2484 }
 0xa16   : > { %v1801_v42 = vadd.f32 %v1800_v20, %v1799_v39 }
 0xa18   : > { %2486 = vtanh.f32 %v1801_v42 }
 0xa22   : > { %v2487_v44 = vpop.eup %2486 }
 0xa23   : > { %v1803_v45 = vmul.f32 %v2487_v44, %v2485_v41 }
 0xa25   : > { %v1816_v47 = vsel %vm348_vm0, %v3346_v43, %v1803_v45 }
 0xa26   : > { %2181 = vmatmul.mubr.f32.vlgmr.msra.gmra.mrb[36].mxu1 %v1816_v47 }
 0xaf9   : > { %v1906_v40 = vpop.f32.mrb[36].mxu1 }
 0xafa   : > { %v1907_v9 = vadd.f32 %v2115_v12, %v1906_v40  ;;  %v2182_v4 = vpop.f32.mrb[37].mxu1 }
 0xafc   : > { %1910 = vmax.xlane.f32.xlu0 %v1907_v9 }
 0xb89   : > { %v1911_v5 = vpop.xlane.xlu0 %1910 }
 0xb8a   : > { %v1912_v11 = vsub.f32 %v1907_v9, %v1911_v5 }
 0xb8c   : > { %v1913_v13 = vmul.f32 1.442695, %v1912_v11 }
 0xb8e   : > { %2488 = vpow2.f32 %v1913_v13 }
 0xb98   : > { %v2489_v7 = vpop.eup %2488 }
 0xb99   : > { %1915 = vadd.xlane.f32.xlu1 %v2489_v7 }
 0xc26   : > { %v1916_v3 = vpop.xlane.xlu1 %1915 }
 0xc27   : > { %2490 = vlog2.f32 %v1916_v3 }
 0xc31   : > { %v2491_v43 = vpop.eup %2490 }
 0xc32   : > { %v1918_v8 = vmul.f32 0.6931472, %v2491_v43 }
 0xc34   : > { %v1919_v38 = vsub.f32 %v1912_v11, %v1918_v8 }
 0xc36   : > { %1920 = vst [vmem:[%s313_s26] sm:$0xff] %v1919_v38 }
 0xc37   : > { %2620 = shalt.err (!%p2617_p9)
}
 0xc38   : > { %s2621_s8 = scalar_lea.hbm %s3365_s9, 128  ;;  %s2625_s19 = scalar_lea.hbm %s3414_s7, 256 }
 0xc39   : > { %p2622_p2 = scmp.ne.s32.totalorder %s3365_s9, %s2621_s8  ;;  %p2626_p5 = scmp.lt.u32.totalorder %s3365_s9, %s3414_s7 }
 0xc3a   : > { %p2627_p10 = scmp.lt.u32.totalorder %s2625_s19, %s2621_s8  ;;  %p2629_p12 = scmp.lt.u32.totalorder %s2621_s8, %s3365_s9 }
 0xc3b   : > { %p2623_p3 = pnand %p2622_p2, %p3434_p7 }
 0xc3c   : > { %p2628_p4 = por %p2627_p10, %p2626_p5 }
 0xc3d   : > { %p2624_p0 = pneg %p2623_p3 }
 0xc3e   : > { %p2630_p8 = por %p2629_p12, %p2628_p4 }
 0xc40   : > { %p2631_p11 = pnand %p2630_p8, %p2624_p0 }
 0xc42   : > { %2634 = shalt.err (!%p2631_p11)
}
 0xc43   : > { %2219 = dma.vmem_to_hbm [thread:$0]  (%p3434_p7), %s3367_s13, 128, %s3365_s9, %s1922_s30  }
 0xc44 PF: > { %p2241_p13 = scmp.ge.s32.totalorder %s2677_s27, 2  ;;  %s1947_s21 = sand.u32 1, %s2665_s24  }
 0xc45   : > { %p3435_p1 = scmp.ne.s32.totalorder %s3425_s12, 0  ;;  %s1948_s22 = scalar_lea.sflag [#allocation4], %s1947_s21 }
 0xc47   : > { %p2232_p6 = pnand %p2241_p13, %p3435_p1 }
 0xc49   : > { %2660 = dma.done.wait (!%p2232_p6), %s1948_s22, 128  }
 0xc4a   : > { %2662 = vsyncadd (!%p2232_p6), %s1948_s22, 4294967168  ;;  %s3436_s27 = sld [smem:[#allocation13_spill]]  ;;  %s3437_s26 = sld [smem:[#allocation12_spill]] }
 0xc4b   : > { %s3438_s16 = sld [smem:[#allocation14_spill]]  ;;  %s3439_s24 = smov %s2669_s25 }
 0xc50   : > { %p19_p9 = scmp.ge.s32.totalorder %s3436_s27, 4   ;;  %s3440_s25 = smov %s3437_s26 }
 0xc51   : > { %s3441_s26 = smov %s3438_s16 }
 0xc52   :  { %21 = sbr.rel (!%p19_p9) target bundleno = 5 (0x5), region = 96 }
 0xc59   :  { %1953 = vsyncpa [#allocation3], 1 }
 0xc5a   :  { %1955 = vsyncpa [#allocation3 + $0x1], 1 }
 0xc5b   :  { %1956 = vsyncpa [#allocation6], 1 }
 0xc5c   :  { %1957 = vsyncpa [#allocation4], 1 }
 0xc5d   :  { %1959 = vsyncpa [#allocation4 + $0x1], 1 }

</bundles_post_ra>
